<compile_context>
chip_gen: v7x
topology: tpu7x:2x2x1
jax: 0.10.0
libtpu: 0.0.40
codegen_flags: <defaults>
</compile_context>

<pallas_src>
import functools

import jax
import jax.numpy as jnp
from jax.experimental import pallas as pl
from jax.experimental.pallas import tpu as pltpu


def _round_up(x, m):
    return (x + m - 1) // m * m


def _use_bf16_activations():
    # bf16 EUP/VPU exist on v6e/v7x; v5e and older are f32-only (casting would only
    # add conversion work there).
    try:
        kind = jax.devices()[0].device_kind.lower()
    except Exception:
        return False
    return any(tag in kind for tag in ("v6", "v7", "7x"))


def _lstm_gates(g, c, H, act_bf16):
    """Gate nonlinearities + cell/hidden update from f32 pre-activations g = (..., 4H).

    Shared between the Pallas kernel and the pure-JAX reference so numerics match.
    The c/h update math always stays in f32; only the transcendental inputs are
    (optionally) rounded to bf16 for the v6e/v7x EUP fast path.
    """
    ga = g.astype(jnp.bfloat16) if act_bf16 else g
    i_g = jax.nn.sigmoid(ga[..., 0 * H:1 * H]).astype(jnp.float32)
    f_g = jax.nn.sigmoid(ga[..., 1 * H:2 * H]).astype(jnp.float32)
    g_g = jnp.tanh(ga[..., 2 * H:3 * H]).astype(jnp.float32)
    o_g = jax.nn.sigmoid(ga[..., 3 * H:4 * H]).astype(jnp.float32)
    c_new = f_g * c + i_g * g_g
    if act_bf16:
        ct = jnp.tanh(c_new.astype(jnp.bfloat16)).astype(jnp.float32)
    else:
        ct = jnp.tanh(c_new)
    return o_g * ct, c_new


def sentiment_rnn_kernel(
    # inputs
    x_ref,      # (1, Tb, BT, E)  bf16  contiguous time chunk for this batch tile
    h0_ref,     # (2, BT, H)      f32   initial hidden (per layer)
    c0_ref,     # (2, BT, H)      f32   initial cell   (per layer)
    wx1_ref,    # (E, 4H)         bf16  W_ih layer 1
    wh1_ref,    # (H, 4H)         bf16  W_hh layer 1
    b1_ref,     # (1, 4H)         f32   b_ih + b_hh layer 1
    wx2_ref,    # (H, 4H)         bf16  W_ih layer 2
    wh2_ref,    # (H, 4H)         bf16  W_hh layer 2
    b2_ref,     # (1, 4H)         f32   b_ih + b_hh layer 2
    # outputs (double duty: the resident h/c carry across time chunks)
    hn_ref,     # (2, BT, H)      f32
    cn_ref,     # (2, BT, H)      f32
    # scratch
    xg_ref,     # (Tb, BT, 4H)    f32   chunk-projected layer-1 input gates
    *,
    seq_len, t_block, need_mask, unroll, act_bf16,
):
    # Contract: the time axis MUST be the last (innermost, "arbitrary") grid axis so
    # the hn/cn output blocks stay VMEM-resident across all time chunks of one batch
    # tile (their index_map ignores t). State is (re)initialised at t_chunk == 0.
    t_chunk = pl.program_id(1)
    H = hn_ref.shape[-1]
    BT = hn_ref.shape[-2]
    E = x_ref.shape[-1]

    @pl.when(t_chunk == 0)
    def _():
        hn_ref[...] = h0_ref[...]
        cn_ref[...] = c0_ref[...]

    # ---- time-parallel work, off the serial path: layer-1 input projection for the
    # whole chunk as one big MXU matmul (M = t_block*BT), plus bias.
    xg = jnp.dot(
        x_ref[0].reshape(t_block * BT, E), wx1_ref[...],
        preferred_element_type=jnp.float32,
    )
    xg_ref[...] = xg.reshape(t_block, BT, 4 * H) + b1_ref[...]

    # Resident weights / bias loaded (and bias broadcast) once per chunk, outside
    # the step loop.
    wh1 = wh1_ref[...]
    wx2 = wx2_ref[...]
    wh2 = wh2_ref[...]
    b2 = jnp.broadcast_to(b2_ref[...], (BT, 4 * H))

    def step(i, carry):
        h1, c1, h2, c2 = carry
        # Layer 1: only the recurrent matmul remains on the serial path.
        g1 = xg_ref[i] + jnp.dot(h1.astype(jnp.bfloat16), wh1,
                                 preferred_element_type=jnp.float32)
        h1n, c1n = _lstm_gates(g1, c1, H, act_bf16)
        # Layer 2: two small dots instead of a per-step concatenate.
        # TODO(synk): LSTM inter-layer dropout (p=0.5) and nn.Dropout(p=0.3) are
        # identity in eval mode, so they are intentionally omitted.
        g2 = (jnp.dot(h1n.astype(jnp.bfloat16), wx2, preferred_element_type=jnp.float32)
              + jnp.dot(h2.astype(jnp.bfloat16), wh2, preferred_element_type=jnp.float32)
              + b2)
        h2n, c2n = _lstm_gates(g2, c2, H, act_bf16)
        if need_mask:  # only traced when T was padded up to a multiple of t_block
            valid = (t_chunk * t_block + i) < seq_len
            h1n = jnp.where(valid, h1n, h1)
            c1n = jnp.where(valid, c1n, c1)
            h2n = jnp.where(valid, h2n, h2)
            c2n = jnp.where(valid, c2n, c2)
        return h1n, c1n, h2n, c2n

    carry = (hn_ref[0], cn_ref[0], hn_ref[1], cn_ref[1])
    h1, c1, h2, c2 = jax.lax.fori_loop(0, t_block, step, carry, unroll=unroll)
    hn_ref[0] = h1
    cn_ref[0] = c1
    hn_ref[1] = h2
    cn_ref[1] = c2


@functools.partial(jax.jit, static_argnames=("act_bf16",))
def sentiment_rnn_forward(token_ids, hidden, params, *, act_bf16=False):
    """Full forward pass of SentimentRNN.

    token_ids: (B, T) int32
    hidden: (h0, c0) each (n_layers=2, B, H)
    returns: (sig_out (B,), (h_n, c_n))
    """
    h0, c0 = hidden
    B, T = token_ids.shape
    H = h0.shape[-1]
    n_layers = h0.shape[0]

    # Embedding lookup (pure gather, glue) in bf16, time-major layout.
    emb = params["embedding"].astype(jnp.bfloat16)            # (V, E)
    E = emb.shape[1]
    x = jnp.take(emb, token_ids, axis=0)                      # (B, T, E) bf16
    x = jnp.transpose(x, (1, 0, 2))                           # (T, B, E)

    # ---- batch tiling: >=2 "parallel" tiles when the batch is big enough (v7x
    # megacore) without blind round-up-to-128 padding; sublane-aligned, capped at 128
    # rows (MXU M). TODO(synk): BT=256 is worth trying on v6e/v7x once B >= ~256.
    B8 = _round_up(B, 8)
    nbt = max(-(-B8 // 128), 2 if B8 >= 32 else 1)
    BT = _round_up(-(-B8 // nbt), 8)
    B_pad = nbt * BT

    # ---- time chunking: prefer a t_block that divides T (mask never traced),
    # otherwise pad the last chunk and mask inside the kernel.
    if T <= 64:
        t_block = T
    else:
        t_block = next((c for c in (64, 32, 16, 8) if T % c == 0), 64)
    num_tc = -(-T // t_block)
    T_pad = num_tc * t_block
    need_mask = (T_pad != T)

    if (T_pad, B_pad) != (T, B):
        x = jnp.pad(x, ((0, T_pad - T), (0, B_pad - B), (0, 0)))
    if B_pad != B:
        h0 = jnp.pad(h0, ((0, 0), (0, B_pad - B), (0, 0)))
        c0 = jnp.pad(c0, ((0, 0), (0, B_pad - B), (0, 0)))

    # Batch-tile-major layout so each (t_block, BT, E) grid block is one fully
    # contiguous HBM slab (one-time XLA transpose instead of strided chunk DMAs).
    x = x.reshape(T_pad, nbt, BT, E).transpose(1, 0, 2, 3)    # (nbt, T_pad, BT, E)

    # LSTM weights in bf16; input and recurrent matrices kept separate so the input
    # projection can be hoisted off the serial path inside the kernel.
    wx1 = params["w_ih_l0"].astype(jnp.bfloat16)              # (E, 4H)
    wh1 = params["w_hh_l0"].astype(jnp.bfloat16)              # (H, 4H)
    wx2 = params["w_ih_l1"].astype(jnp.bfloat16)              # (H, 4H)
    wh2 = params["w_hh_l1"].astype(jnp.bfloat16)              # (H, 4H)
    b1 = params["b_l0"]
    b2 = params["b_l1"]

    unroll = min(t_block, 8 if H < 128 else 2)

    kernel = functools.partial(
        sentiment_rnn_kernel,
        seq_len=T, t_block=t_block, need_mask=need_mask,
        unroll=unroll, act_bf16=act_bf16,
    )

    # Weights/biases never change block index -> single-buffer them.
    const = dict(pipeline_mode=pl.Buffered(1))

    grid_spec = pltpu.PrefetchScalarGridSpec(
        num_scalar_prefetch=0,
        grid=(nbt, num_tc),                                   # (batch tiles, time)
        in_specs=[
            pl.BlockSpec((1, t_block, BT, E), lambda b, t: (b, t, 0, 0)),   # x chunk
            pl.BlockSpec((n_layers, BT, H), lambda b, t: (0, b, 0)),        # h0
            pl.BlockSpec((n_layers, BT, H), lambda b, t: (0, b, 0)),        # c0
            pl.BlockSpec((E, 4 * H), lambda b, t: (0, 0), **const),         # W_ih l0
            pl.BlockSpec((H, 4 * H), lambda b, t: (0, 0), **const),         # W_hh l0
            pl.BlockSpec((1, 4 * H), lambda b, t: (0, 0), **const),         # bias l0
            pl.BlockSpec((H, 4 * H), lambda b, t: (0, 0), **const),         # W_ih l1
            pl.BlockSpec((H, 4 * H), lambda b, t: (0, 0), **const),         # W_hh l1
            pl.BlockSpec((1, 4 * H), lambda b, t: (0, 0), **const),         # bias l1
        ],
        out_specs=[
            pl.BlockSpec((n_layers, BT, H), lambda b, t: (0, b, 0)),        # h_n
            pl.BlockSpec((n_layers, BT, H), lambda b, t: (0, b, 0)),        # c_n
        ],
        scratch_shapes=[
            pltpu.VMEM((t_block, BT, 4 * H), jnp.float32),    # chunk input gates
        ],
    )

    # Explicit scoped-VMEM budget: x chunk (double-buffered) + gate scratch +
    # single-buffered weights + state blocks, with 2x headroom, capped to stay well
    # inside v7x's 64 MiB physical VMEM (v5e/v6e have more).
    est = (2 * t_block * BT * E * 2
           + t_block * BT * 4 * H * 4
           + (E + 3 * H) * 4 * H * 2
           + 2 * 4 * H * 4
           + 8 * n_layers * BT * H * 4)
    vmem_limit = int(min(48 * 1024 * 1024, max(32 * 1024 * 1024, 2 * est)))

    h_n, c_n = pl.pallas_call(
        kernel,
        out_shape=(
            jax.ShapeDtypeStruct((n_layers, B_pad, H), jnp.float32),
            jax.ShapeDtypeStruct((n_layers, B_pad, H), jnp.float32),
        ),
        grid_spec=grid_spec,
        compiler_params=pltpu.CompilerParams(
            # Batch tiles are independent (sharded across v7x's 2 TCs); time chunks
            # carry state through the resident hn/cn blocks -> sequential, innermost.
            dimension_semantics=("parallel", "arbitrary"),
            vmem_limit_bytes=vmem_limit,
        ),
    )(x, h0, c0, wx1, wh1, b1, wx2, wh2, b2)

    # Padded batch rows contain garbage: slice them off before anything else sees them.
    h_n = h_n[:, :B]
    c_n = c_n[:, :B]

    # fc1 + sigmoid hoisted out of the kernel: with output_size == 1 only the last
    # time step's value survives (== sig_out.view(batch, -1)[:, -1] in PyTorch).
    logits = h_n[1] @ params["w_fc"] + params["b_fc"]         # (B, 1) f32
    sig_out = jax.nn.sigmoid(logits)[:, 0]
    return sig_out, (h_n, c_n)


def reference_forward(token_ids, hidden, params, *, act_bf16=False):
    """Pure-JAX reference (lax.scan) mirroring the kernel's numerics (bf16 matmul
    operands, f32 accumulation, hoisted input projection, optional bf16 gate
    activations) for a tight correctness check."""
    h0, c0 = hidden
    bf = lambda a: a.astype(jnp.bfloat16)
    H = h0.shape[-1]

    x = jnp.take(bf(params["embedding"]), token_ids, axis=0)   # (B, T, E) bf16
    x = jnp.transpose(x, (1, 0, 2))                            # (T, B, E)

    wx1, wh1 = bf(params["w_ih_l0"]), bf(params["w_hh_l0"])
    wx2, wh2 = bf(params["w_ih_l1"]), bf(params["w_hh_l1"])
    b1, b2 = params["b_l0"], params["b_l1"]

    # Hoisted layer-1 input projection (mirrors the kernel).
    xg = jnp.dot(x, wx1, preferred_element_type=jnp.float32) + b1   # (T, B, 4H) f32

    def step(carry, xg_t):
        h1, c1, h2, c2 = carry
        g1 = xg_t + jnp.dot(bf(h1), wh1, preferred_element_type=jnp.float32)
        h1n, c1n = _lstm_gates(g1, c1, H, act_bf16)
        g2 = (jnp.dot(bf(h1n), wx2, preferred_element_type=jnp.float32)
              + jnp.dot(bf(h2), wh2, preferred_element_type=jnp.float32) + b2)
        h2n, c2n = _lstm_gates(g2, c2, H, act_bf16)
        return (h1n, c1n, h2n, c2n), None

    (h1, c1, h2, c2), _ = jax.lax.scan(step, (h0[0], c0[0], h0[1], c0[1]), xg)
    sig = jax.nn.sigmoid(h2 @ params["w_fc"] + params["b_fc"])[:, 0]
    return sig, (jnp.stack([h1, h2]), jnp.stack([c1, c2]))


def init_params(key, vocab_size, embedding_dim, hidden_dim, output_size):
    ks = jax.random.split(key, 10)
    s = 0.1
    E, H = embedding_dim, hidden_dim
    return {
        "embedding": jax.random.normal(ks[0], (vocab_size, E), jnp.float32) * s,
        # stored pre-transposed relative to PyTorch: (in_features, 4H)
        "w_ih_l0": jax.random.normal(ks[1], (E, 4 * H), jnp.float32) * s,
        "w_hh_l0": jax.random.normal(ks[2], (H, 4 * H), jnp.float32) * s,
        "b_l0": jax.random.normal(ks[3], (1, 4 * H), jnp.float32) * s,   # b_ih + b_hh
        "w_ih_l1": jax.random.normal(ks[4], (H, 4 * H), jnp.float32) * s,
        "w_hh_l1": jax.random.normal(ks[5], (H, 4 * H), jnp.float32) * s,
        "b_l1": jax.random.normal(ks[6], (1, 4 * H), jnp.float32) * s,
        "w_fc": jax.random.normal(ks[7], (H, output_size), jnp.float32) * s,
        "b_fc": jax.random.normal(ks[8], (1, output_size), jnp.float32) * s,
    }


if __name__ == "__main__":
    # Small shapes consistent with the module (scaled-down vocab/embedding/hidden).
    VOCAB, E, H, OUT = 100, 32, 32, 1
    B, T = 4, 8

    key = jax.random.PRNGKey(0)
    kp, kx = jax.random.split(key)
    params = init_params(kp, VOCAB, E, H, OUT)

    token_ids = jax.random.randint(kx, (B, T), 1, VOCAB, dtype=jnp.int32)
    # init_hidden: zeros of shape (n_layers, batch, hidden)
    h0 = jnp.zeros((2, B, H), jnp.float32)
    c0 = jnp.zeros((2, B, H), jnp.float32)

    act_bf16 = _use_bf16_activations()   # bf16 EUP path on v6e/v7x, f32 on v5e

    sig_out, (h_n, c_n) = sentiment_rnn_forward(
        token_ids, (h0, c0), params, act_bf16=act_bf16)
    jax.block_until_ready((sig_out, h_n, c_n))

    # Correctness check against pure-JAX reference with matching numerics.
    ref_sig, (ref_h, ref_c) = reference_forward(
        token_ids, (h0, c0), params, act_bf16=act_bf16)
    # bf16 gate activations round both pipelines to ~3 decimal digits -> wider tol.
    tol = 1e-2 if act_bf16 else 1e-3
    assert sig_out.shape == (B,)
    assert jnp.allclose(sig_out, ref_sig, rtol=tol, atol=tol)
    assert jnp.allclose(h_n, ref_h, rtol=tol, atol=tol)
    assert jnp.allclose(c_n, ref_c, rtol=tol, atol=tol)

    print("KERNEL_OK")
</pallas_src>

<mosaic_0001>
module attributes {stable_mosaic.version = 11 : i64} {
  func.func @sentiment_rnn_kernel(%arg0: i32, %arg1: i32, %arg2: memref<1x8x8x32xbf16, #tpu.memory_space<vmem>>, %arg3: memref<2x8x32xf32, #tpu.memory_space<vmem>>, %arg4: memref<2x8x32xf32, #tpu.memory_space<vmem>>, %arg5: memref<32x128xbf16, #tpu.memory_space<vmem>>, %arg6: memref<32x128xbf16, #tpu.memory_space<vmem>>, %arg7: memref<1x128xf32, #tpu.memory_space<vmem>>, %arg8: memref<32x128xbf16, #tpu.memory_space<vmem>>, %arg9: memref<32x128xbf16, #tpu.memory_space<vmem>>, %arg10: memref<1x128xf32, #tpu.memory_space<vmem>>, %arg11: memref<2x8x32xf32, #tpu.memory_space<vmem>>, %arg12: memref<2x8x32xf32, #tpu.memory_space<vmem>>, %arg13: memref<8x8x128xf32, #tpu.memory_space<vmem>>) attributes {dimension_semantics = [#tpu.dimension_semantics<parallel>, #tpu.dimension_semantics<arbitrary>], iteration_bounds = array<i64: 1, 1>, scalar_prefetch = 0 : i64, scratch_operands = 1 : i64, tpu.core_type = #tpu.core_type<tc>, window_params = [{transform_indices = @transform_0, window_bounds = array<i64: 1, 8, 8, 32>}, {transform_indices = @transform_1, window_bounds = array<i64: 2, 8, 32>}, {transform_indices = @transform_2, window_bounds = array<i64: 2, 8, 32>}, {pipeline_mode = #tpu.pipeline_mode<synchronous>, transform_indices = @transform_3, window_bounds = array<i64: 32, 128>}, {pipeline_mode = #tpu.pipeline_mode<synchronous>, transform_indices = @transform_4, window_bounds = array<i64: 32, 128>}, {pipeline_mode = #tpu.pipeline_mode<synchronous>, transform_indices = @transform_5, window_bounds = array<i64: 1, 128>}, {pipeline_mode = #tpu.pipeline_mode<synchronous>, transform_indices = @transform_6, window_bounds = array<i64: 32, 128>}, {pipeline_mode = #tpu.pipeline_mode<synchronous>, transform_indices = @transform_7, window_bounds = array<i64: 32, 128>}, {pipeline_mode = #tpu.pipeline_mode<synchronous>, transform_indices = @transform_8, window_bounds = array<i64: 1, 128>}, {transform_indices = @transform_9, window_bounds = array<i64: 2, 8, 32>}, {transform_indices = @transform_10, window_bounds = array<i64: 2, 8, 32>}]} {
    %c0_i32 = arith.constant 0 : i32
    %0 = arith.cmpi eq, %arg1, %c0_i32 : i32
    %1 = arith.extui %0 : i1 to i32
    %c0_i32_0 = arith.constant 0 : i32
    %2 = arith.cmpi ne, %1, %c0_i32_0 : i32
    scf.if %2 {
      %c0_131 = arith.constant 0 : index
      %c0_132 = arith.constant 0 : index
      %c0_133 = arith.constant 0 : index
      %536 = vector.load %arg3[%c0_131, %c0_132, %c0_133] : memref<2x8x32xf32, #tpu.memory_space<vmem>>, vector<2x8x32xf32>
      %c0_134 = arith.constant 0 : index
      %c0_135 = arith.constant 0 : index
      %c0_136 = arith.constant 0 : index
      %537 = vector.load %arg11[%c0_134, %c0_135, %c0_136] : memref<2x8x32xf32, #tpu.memory_space<vmem>>, vector<2x8x32xf32>
      tpu.vector_store %arg11[%c0_134, %c0_135, %c0_136], %536 {strides = array<i32>} : memref<2x8x32xf32, #tpu.memory_space<vmem>>, vector<2x8x32xf32>,
      %c0_137 = arith.constant 0 : index
      %c0_138 = arith.constant 0 : index
      %c0_139 = arith.constant 0 : index
      %538 = vector.load %arg4[%c0_137, %c0_138, %c0_139] : memref<2x8x32xf32, #tpu.memory_space<vmem>>, vector<2x8x32xf32>
      %c0_140 = arith.constant 0 : index
      %c0_141 = arith.constant 0 : index
      %c0_142 = arith.constant 0 : index
      %539 = vector.load %arg12[%c0_140, %c0_141, %c0_142] : memref<2x8x32xf32, #tpu.memory_space<vmem>>, vector<2x8x32xf32>
      tpu.vector_store %arg12[%c0_140, %c0_141, %c0_142], %538 {strides = array<i32>} : memref<2x8x32xf32, #tpu.memory_space<vmem>>, vector<2x8x32xf32>,
    } else {
    }
    %c0 = arith.constant 0 : index
    %c0_1 = arith.constant 0 : index
    %c0_2 = arith.constant 0 : index
    %c0_3 = arith.constant 0 : index
    %3 = vector.load %arg2[%c0, %c0_1, %c0_2, %c0_3] : memref<1x8x8x32xbf16, #tpu.memory_space<vmem>>, vector<1x8x8x32xbf16>
    %4 = vector.shape_cast %3 : vector<1x8x8x32xbf16> to vector<8x8x32xbf16>
    %5 = vector.shape_cast %4 : vector<8x8x32xbf16> to vector<64x32xbf16>
    %c0_4 = arith.constant 0 : index
    %c0_5 = arith.constant 0 : index
    %6 = vector.load %arg5[%c0_4, %c0_5] : memref<32x128xbf16, #tpu.memory_space<vmem>>, vector<32x128xbf16>
    %cst = arith.constant dense<0.000000e+00> : vector<64x128xf32>
    %7 = tpu.matmul %5, %6, %cst {dimension_numbers = #tpu.dot_dimension_numbers<[1], [0], [0], [1], [0, 0, 1, 1], [], []>} : vector<64x32xbf16>, vector<32x128xbf16>, vector<64x128xf32> -> vector<64x128xf32>
    %8 = vector.shape_cast %7 : vector<64x128xf32> to vector<8x8x128xf32>
    %c0_6 = arith.constant 0 : index
    %c0_7 = arith.constant 0 : index
    %9 = vector.load %arg7[%c0_6, %c0_7] : memref<1x128xf32, #tpu.memory_space<vmem>>, vector<1x128xf32>
    %10 = vector.shape_cast %9 : vector<1x128xf32> to vector<1x1x128xf32>
    %11 = vector.broadcast %10 : vector<1x1x128xf32> to vector<8x8x128xf32>
    %12 = arith.addf %8, %11 : vector<8x8x128xf32>
    %c0_8 = arith.constant 0 : index
    %c0_9 = arith.constant 0 : index
    %c0_10 = arith.constant 0 : index
    %13 = vector.load %arg13[%c0_8, %c0_9, %c0_10] : memref<8x8x128xf32, #tpu.memory_space<vmem>>, vector<8x8x128xf32>
    tpu.vector_store %arg13[%c0_8, %c0_9, %c0_10], %12 {strides = array<i32>} : memref<8x8x128xf32, #tpu.memory_space<vmem>>, vector<8x8x128xf32>,
    %c0_11 = arith.constant 0 : index
    %c0_12 = arith.constant 0 : index
    %14 = vector.load %arg6[%c0_11, %c0_12] : memref<32x128xbf16, #tpu.memory_space<vmem>>, vector<32x128xbf16>
    %c0_13 = arith.constant 0 : index
    %c0_14 = arith.constant 0 : index
    %15 = vector.load %arg8[%c0_13, %c0_14] : memref<32x128xbf16, #tpu.memory_space<vmem>>, vector<32x128xbf16>
    %c0_15 = arith.constant 0 : index
    %c0_16 = arith.constant 0 : index
    %16 = vector.load %arg9[%c0_15, %c0_16] : memref<32x128xbf16, #tpu.memory_space<vmem>>, vector<32x128xbf16>
    %c0_17 = arith.constant 0 : index
    %c0_18 = arith.constant 0 : index
    %17 = vector.load %arg10[%c0_17, %c0_18] : memref<1x128xf32, #tpu.memory_space<vmem>>, vector<1x128xf32>
    %18 = vector.shape_cast %17 : vector<1x128xf32> to vector<1x128xf32>
    %19 = vector.broadcast %18 : vector<1x128xf32> to vector<8x128xf32>
    %c0_19 = arith.constant 0 : index
    %c0_20 = arith.constant 0 : index
    %c0_21 = arith.constant 0 : index
    %20 = vector.load %arg11[%c0_19, %c0_20, %c0_21] : memref<2x8x32xf32, #tpu.memory_space<vmem>>, vector<1x8x32xf32>
    %21 = vector.shape_cast %20 : vector<1x8x32xf32> to vector<8x32xf32>
    %c0_22 = arith.constant 0 : index
    %c0_23 = arith.constant 0 : index
    %c0_24 = arith.constant 0 : index
    %22 = vector.load %arg12[%c0_22, %c0_23, %c0_24] : memref<2x8x32xf32, #tpu.memory_space<vmem>>, vector<1x8x32xf32>
    %23 = vector.shape_cast %22 : vector<1x8x32xf32> to vector<8x32xf32>
    %c1 = arith.constant 1 : index
    %c0_25 = arith.constant 0 : index
    %c0_26 = arith.constant 0 : index
    %24 = vector.load %arg11[%c1, %c0_25, %c0_26] : memref<2x8x32xf32, #tpu.memory_space<vmem>>, vector<1x8x32xf32>
    %25 = vector.shape_cast %24 : vector<1x8x32xf32> to vector<8x32xf32>
    %c1_27 = arith.constant 1 : index
    %c0_28 = arith.constant 0 : index
    %c0_29 = arith.constant 0 : index
    %26 = vector.load %arg12[%c1_27, %c0_28, %c0_29] : memref<2x8x32xf32, #tpu.memory_space<vmem>>, vector<1x8x32xf32>
    %27 = vector.shape_cast %26 : vector<1x8x32xf32> to vector<8x32xf32>
    %c0_i32_30 = arith.constant 0 : i32
    %28 = arith.index_cast %c0_i32_30 : i32 to index
    %c0_31 = arith.constant 0 : index
    %c0_32 = arith.constant 0 : index
    %29 = vector.load %arg13[%28, %c0_31, %c0_32] : memref<8x8x128xf32, #tpu.memory_space<vmem>>, vector<1x8x128xf32>
    %30 = vector.shape_cast %29 : vector<1x8x128xf32> to vector<8x128xf32>
    %31 = arith.truncf %21 : vector<8x32xf32> to vector<8x32xbf16>
    %cst_33 = arith.constant dense<0.000000e+00> : vector<8x128xf32>
    %32 = tpu.matmul %31, %14, %cst_33 {dimension_numbers = #tpu.dot_dimension_numbers<[1], [0], [0], [1], [0, 0, 1, 1], [], []>} : vector<8x32xbf16>, vector<32x128xbf16>, vector<8x128xf32> -> vector<8x128xf32>
    %33 = arith.addf %30, %32 : vector<8x128xf32>
    %34 = vector.extract_strided_slice %33 {offsets = [0, 0], sizes = [8, 32], strides = [1, 1]} : vector<8x128xf32> to vector<8x32xf32>
    %35 = arith.negf %34 : vector<8x32xf32>
    %36 = math.exp %35 : vector<8x32xf32>
    %cst_34 = arith.constant 1.000000e+00 : f32
    %37 = vector.broadcast %cst_34 : f32 to vector<8x32xf32>
    %38 = arith.addf %37, %36 : vector<8x32xf32>
    %39 = arith.divf %37, %38 : vector<8x32xf32>
    %40 = vector.extract_strided_slice %33 {offsets = [0, 32], sizes = [8, 32], strides = [1, 1]} : vector<8x128xf32> to vector<8x32xf32>
    %41 = arith.negf %40 : vector<8x32xf32>
    %42 = math.exp %41 : vector<8x32xf32>
    %cst_35 = arith.constant 1.000000e+00 : f32
    %43 = vector.broadcast %cst_35 : f32 to vector<8x32xf32>
    %44 = arith.addf %43, %42 : vector<8x32xf32>
    %45 = arith.divf %43, %44 : vector<8x32xf32>
    %46 = vector.extract_strided_slice %33 {offsets = [0, 64], sizes = [8, 32], strides = [1, 1]} : vector<8x128xf32> to vector<8x32xf32>
    %47 = math.tanh %46 : vector<8x32xf32>
    %48 = vector.extract_strided_slice %33 {offsets = [0, 96], sizes = [8, 32], strides = [1, 1]} : vector<8x128xf32> to vector<8x32xf32>
    %49 = arith.negf %48 : vector<8x32xf32>
    %50 = math.exp %49 : vector<8x32xf32>
    %cst_36 = arith.constant 1.000000e+00 : f32
    %51 = vector.broadcast %cst_36 : f32 to vector<8x32xf32>
    %52 = arith.addf %51, %50 : vector<8x32xf32>
    %53 = arith.divf %51, %52 : vector<8x32xf32>
    %54 = arith.mulf %45, %23 : vector<8x32xf32>
    %55 = arith.mulf %39, %47 : vector<8x32xf32>
    %56 = arith.addf %54, %55 : vector<8x32xf32>
    %57 = math.tanh %56 : vector<8x32xf32>
    %58 = arith.mulf %53, %57 : vector<8x32xf32>
    %59 = arith.truncf %58 : vector<8x32xf32> to vector<8x32xbf16>
    %cst_37 = arith.constant dense<0.000000e+00> : vector<8x128xf32>
    %60 = tpu.matmul %59, %15, %cst_37 {dimension_numbers = #tpu.dot_dimension_numbers<[1], [0], [0], [1], [0, 0, 1, 1], [], []>} : vector<8x32xbf16>, vector<32x128xbf16>, vector<8x128xf32> -> vector<8x128xf32>
    %61 = arith.truncf %25 : vector<8x32xf32> to vector<8x32xbf16>
    %cst_38 = arith.constant dense<0.000000e+00> : vector<8x128xf32>
    %62 = tpu.matmul %61, %16, %cst_38 {dimension_numbers = #tpu.dot_dimension_numbers<[1], [0], [0], [1], [0, 0, 1, 1], [], []>} : vector<8x32xbf16>, vector<32x128xbf16>, vector<8x128xf32> -> vector<8x128xf32>
    %63 = arith.addf %60, %62 : vector<8x128xf32>
    %64 = arith.addf %63, %19 : vector<8x128xf32>
    %65 = vector.extract_strided_slice %64 {offsets = [0, 0], sizes = [8, 32], strides = [1, 1]} : vector<8x128xf32> to vector<8x32xf32>
    %66 = arith.negf %65 : vector<8x32xf32>
    %67 = math.exp %66 : vector<8x32xf32>
    %cst_39 = arith.constant 1.000000e+00 : f32
    %68 = vector.broadcast %cst_39 : f32 to vector<8x32xf32>
    %69 = arith.addf %68, %67 : vector<8x32xf32>
    %70 = arith.divf %68, %69 : vector<8x32xf32>
    %71 = vector.extract_strided_slice %64 {offsets = [0, 32], sizes = [8, 32], strides = [1, 1]} : vector<8x128xf32> to vector<8x32xf32>
    %72 = arith.negf %71 : vector<8x32xf32>
    %73 = math.exp %72 : vector<8x32xf32>
    %cst_40 = arith.constant 1.000000e+00 : f32
    %74 = vector.broadcast %cst_40 : f32 to vector<8x32xf32>
    %75 = arith.addf %74, %73 : vector<8x32xf32>
    %76 = arith.divf %74, %75 : vector<8x32xf32>
    %77 = vector.extract_strided_slice %64 {offsets = [0, 64], sizes = [8, 32], strides = [1, 1]} : vector<8x128xf32> to vector<8x32xf32>
    %78 = math.tanh %77 : vector<8x32xf32>
    %79 = vector.extract_strided_slice %64 {offsets = [0, 96], sizes = [8, 32], strides = [1, 1]} : vector<8x128xf32> to vector<8x32xf32>
    %80 = arith.negf %79 : vector<8x32xf32>
    %81 = math.exp %80 : vector<8x32xf32>
    %cst_41 = arith.constant 1.000000e+00 : f32
    %82 = vector.broadcast %cst_41 : f32 to vector<8x32xf32>
    %83 = arith.addf %82, %81 : vector<8x32xf32>
    %84 = arith.divf %82, %83 : vector<8x32xf32>
    %85 = arith.mulf %76, %27 : vector<8x32xf32>
    %86 = arith.mulf %70, %78 : vector<8x32xf32>
    %87 = arith.addf %85, %86 : vector<8x32xf32>
    %88 = math.tanh %87 : vector<8x32xf32>
    %89 = arith.mulf %84, %88 : vector<8x32xf32>
    %c1_i32 = arith.constant 1 : i32
    %90 = arith.index_cast %c1_i32 : i32 to index
    %c0_42 = arith.constant 0 : index
    %c0_43 = arith.constant 0 : index
    %91 = vector.load %arg13[%90, %c0_42, %c0_43] : memref<8x8x128xf32, #tpu.memory_space<vmem>>, vector<1x8x128xf32>
    %92 = vector.shape_cast %91 : vector<1x8x128xf32> to vector<8x128xf32>
    %93 = arith.truncf %58 : vector<8x32xf32> to vector<8x32xbf16>
    %cst_44 = arith.constant dense<0.000000e+00> : vector<8x128xf32>
    %94 = tpu.matmul %93, %14, %cst_44 {dimension_numbers = #tpu.dot_dimension_numbers<[1], [0], [0], [1], [0, 0, 1, 1], [], []>} : vector<8x32xbf16>, vector<32x128xbf16>, vector<8x128xf32> -> vector<8x128xf32>
    %95 = arith.addf %92, %94 : vector<8x128xf32>
    %96 = vector.extract_strided_slice %95 {offsets = [0, 0], sizes = [8, 32], strides = [1, 1]} : vector<8x128xf32> to vector<8x32xf32>
    %97 = arith.negf %96 : vector<8x32xf32>
    %98 = math.exp %97 : vector<8x32xf32>
    %cst_45 = arith.constant 1.000000e+00 : f32
    %99 = vector.broadcast %cst_45 : f32 to vector<8x32xf32>
    %100 = arith.addf %99, %98 : vector<8x32xf32>
    %101 = arith.divf %99, %100 : vector<8x32xf32>
    %102 = vector.extract_strided_slice %95 {offsets = [0, 32], sizes = [8, 32], strides = [1, 1]} : vector<8x128xf32> to vector<8x32xf32>
    %103 = arith.negf %102 : vector<8x32xf32>
    %104 = math.exp %103 : vector<8x32xf32>
    %cst_46 = arith.constant 1.000000e+00 : f32
    %105 = vector.broadcast %cst_46 : f32 to vector<8x32xf32>
    %106 = arith.addf %105, %104 : vector<8x32xf32>
    %107 = arith.divf %105, %106 : vector<8x32xf32>
    %108 = vector.extract_strided_slice %95 {offsets = [0, 64], sizes = [8, 32], strides = [1, 1]} : vector<8x128xf32> to vector<8x32xf32>
    %109 = math.tanh %108 : vector<8x32xf32>
    %110 = vector.extract_strided_slice %95 {offsets = [0, 96], sizes = [8, 32], strides = [1, 1]} : vector<8x128xf32> to vector<8x32xf32>
    %111 = arith.negf %110 : vector<8x32xf32>
    %112 = math.exp %111 : vector<8x32xf32>
    %cst_47 = arith.constant 1.000000e+00 : f32
    %113 = vector.broadcast %cst_47 : f32 to vector<8x32xf32>
    %114 = arith.addf %113, %112 : vector<8x32xf32>
    %115 = arith.divf %113, %114 : vector<8x32xf32>
    %116 = arith.mulf %107, %56 : vector<8x32xf32>
    %117 = arith.mulf %101, %109 : vector<8x32xf32>
    %118 = arith.addf %116, %117 : vector<8x32xf32>
    %119 = math.tanh %118 : vector<8x32xf32>
    %120 = arith.mulf %115, %119 : vector<8x32xf32>
    %121 = arith.truncf %120 : vector<8x32xf32> to vector<8x32xbf16>
    %cst_48 = arith.constant dense<0.000000e+00> : vector<8x128xf32>
    %122 = tpu.matmul %121, %15, %cst_48 {dimension_numbers = #tpu.dot_dimension_numbers<[1], [0], [0], [1], [0, 0, 1, 1], [], []>} : vector<8x32xbf16>, vector<32x128xbf16>, vector<8x128xf32> -> vector<8x128xf32>
    %123 = arith.truncf %89 : vector<8x32xf32> to vector<8x32xbf16>
    %cst_49 = arith.constant dense<0.000000e+00> : vector<8x128xf32>
    %124 = tpu.matmul %123, %16, %cst_49 {dimension_numbers = #tpu.dot_dimension_numbers<[1], [0], [0], [1], [0, 0, 1, 1], [], []>} : vector<8x32xbf16>, vector<32x128xbf16>, vector<8x128xf32> -> vector<8x128xf32>
    %125 = arith.addf %122, %124 : vector<8x128xf32>
    %126 = arith.addf %125, %19 : vector<8x128xf32>
    %127 = vector.extract_strided_slice %126 {offsets = [0, 0], sizes = [8, 32], strides = [1, 1]} : vector<8x128xf32> to vector<8x32xf32>
    %128 = arith.negf %127 : vector<8x32xf32>
    %129 = math.exp %128 : vector<8x32xf32>
    %cst_50 = arith.constant 1.000000e+00 : f32
    %130 = vector.broadcast %cst_50 : f32 to vector<8x32xf32>
    %131 = arith.addf %130, %129 : vector<8x32xf32>
    %132 = arith.divf %130, %131 : vector<8x32xf32>
    %133 = vector.extract_strided_slice %126 {offsets = [0, 32], sizes = [8, 32], strides = [1, 1]} : vector<8x128xf32> to vector<8x32xf32>
    %134 = arith.negf %133 : vector<8x32xf32>
    %135 = math.exp %134 : vector<8x32xf32>
    %cst_51 = arith.constant 1.000000e+00 : f32
    %136 = vector.broadcast %cst_51 : f32 to vector<8x32xf32>
    %137 = arith.addf %136, %135 : vector<8x32xf32>
    %138 = arith.divf %136, %137 : vector<8x32xf32>
    %139 = vector.extract_strided_slice %126 {offsets = [0, 64], sizes = [8, 32], strides = [1, 1]} : vector<8x128xf32> to vector<8x32xf32>
    %140 = math.tanh %139 : vector<8x32xf32>
    %141 = vector.extract_strided_slice %126 {offsets = [0, 96], sizes = [8, 32], strides = [1, 1]} : vector<8x128xf32> to vector<8x32xf32>
    %142 = arith.negf %141 : vector<8x32xf32>
    %143 = math.exp %142 : vector<8x32xf32>
    %cst_52 = arith.constant 1.000000e+00 : f32
    %144 = vector.broadcast %cst_52 : f32 to vector<8x32xf32>
    %145 = arith.addf %144, %143 : vector<8x32xf32>
    %146 = arith.divf %144, %145 : vector<8x32xf32>
    %147 = arith.mulf %138, %87 : vector<8x32xf32>
    %148 = arith.mulf %132, %140 : vector<8x32xf32>
    %149 = arith.addf %147, %148 : vector<8x32xf32>
    %150 = math.tanh %149 : vector<8x32xf32>
    %151 = arith.mulf %146, %150 : vector<8x32xf32>
    %c2_i32 = arith.constant 2 : i32
    %152 = arith.index_cast %c2_i32 : i32 to index
    %c0_53 = arith.constant 0 : index
    %c0_54 = arith.constant 0 : index
    %153 = vector.load %arg13[%152, %c0_53, %c0_54] : memref<8x8x128xf32, #tpu.memory_space<vmem>>, vector<1x8x128xf32>
    %154 = vector.shape_cast %153 : vector<1x8x128xf32> to vector<8x128xf32>
    %155 = arith.truncf %120 : vector<8x32xf32> to vector<8x32xbf16>
    %cst_55 = arith.constant dense<0.000000e+00> : vector<8x128xf32>
    %156 = tpu.matmul %155, %14, %cst_55 {dimension_numbers = #tpu.dot_dimension_numbers<[1], [0], [0], [1], [0, 0, 1, 1], [], []>} : vector<8x32xbf16>, vector<32x128xbf16>, vector<8x128xf32> -> vector<8x128xf32>
    %157 = arith.addf %154, %156 : vector<8x128xf32>
    %158 = vector.extract_strided_slice %157 {offsets = [0, 0], sizes = [8, 32], strides = [1, 1]} : vector<8x128xf32> to vector<8x32xf32>
    %159 = arith.negf %158 : vector<8x32xf32>
    %160 = math.exp %159 : vector<8x32xf32>
    %cst_56 = arith.constant 1.000000e+00 : f32
    %161 = vector.broadcast %cst_56 : f32 to vector<8x32xf32>
    %162 = arith.addf %161, %160 : vector<8x32xf32>
    %163 = arith.divf %161, %162 : vector<8x32xf32>
    %164 = vector.extract_strided_slice %157 {offsets = [0, 32], sizes = [8, 32], strides = [1, 1]} : vector<8x128xf32> to vector<8x32xf32>
    %165 = arith.negf %164 : vector<8x32xf32>
    %166 = math.exp %165 : vector<8x32xf32>
    %cst_57 = arith.constant 1.000000e+00 : f32
    %167 = vector.broadcast %cst_57 : f32 to vector<8x32xf32>
    %168 = arith.addf %167, %166 : vector<8x32xf32>
    %169 = arith.divf %167, %168 : vector<8x32xf32>
    %170 = vector.extract_strided_slice %157 {offsets = [0, 64], sizes = [8, 32], strides = [1, 1]} : vector<8x128xf32> to vector<8x32xf32>
    %171 = math.tanh %170 : vector<8x32xf32>
    %172 = vector.extract_strided_slice %157 {offsets = [0, 96], sizes = [8, 32], strides = [1, 1]} : vector<8x128xf32> to vector<8x32xf32>
    %173 = arith.negf %172 : vector<8x32xf32>
    %174 = math.exp %173 : vector<8x32xf32>
    %cst_58 = arith.constant 1.000000e+00 : f32
    %175 = vector.broadcast %cst_58 : f32 to vector<8x32xf32>
    %176 = arith.addf %175, %174 : vector<8x32xf32>
    %177 = arith.divf %175, %176 : vector<8x32xf32>
    %178 = arith.mulf %169, %118 : vector<8x32xf32>
    %179 = arith.mulf %163, %171 : vector<8x32xf32>
    %180 = arith.addf %178, %179 : vector<8x32xf32>
    %181 = math.tanh %180 : vector<8x32xf32>
    %182 = arith.mulf %177, %181 : vector<8x32xf32>
    %183 = arith.truncf %182 : vector<8x32xf32> to vector<8x32xbf16>
    %cst_59 = arith.constant dense<0.000000e+00> : vector<8x128xf32>
    %184 = tpu.matmul %183, %15, %cst_59 {dimension_numbers = #tpu.dot_dimension_numbers<[1], [0], [0], [1], [0, 0, 1, 1], [], []>} : vector<8x32xbf16>, vector<32x128xbf16>, vector<8x128xf32> -> vector<8x128xf32>
    %185 = arith.truncf %151 : vector<8x32xf32> to vector<8x32xbf16>
    %cst_60 = arith.constant dense<0.000000e+00> : vector<8x128xf32>
    %186 = tpu.matmul %185, %16, %cst_60 {dimension_numbers = #tpu.dot_dimension_numbers<[1], [0], [0], [1], [0, 0, 1, 1], [], []>} : vector<8x32xbf16>, vector<32x128xbf16>, vector<8x128xf32> -> vector<8x128xf32>
    %187 = arith.addf %184, %186 : vector<8x128xf32>
    %188 = arith.addf %187, %19 : vector<8x128xf32>
    %189 = vector.extract_strided_slice %188 {offsets = [0, 0], sizes = [8, 32], strides = [1, 1]} : vector<8x128xf32> to vector<8x32xf32>
    %190 = arith.negf %189 : vector<8x32xf32>
    %191 = math.exp %190 : vector<8x32xf32>
    %cst_61 = arith.constant 1.000000e+00 : f32
    %192 = vector.broadcast %cst_61 : f32 to vector<8x32xf32>
    %193 = arith.addf %192, %191 : vector<8x32xf32>
    %194 = arith.divf %192, %193 : vector<8x32xf32>
    %195 = vector.extract_strided_slice %188 {offsets = [0, 32], sizes = [8, 32], strides = [1, 1]} : vector<8x128xf32> to vector<8x32xf32>
    %196 = arith.negf %195 : vector<8x32xf32>
    %197 = math.exp %196 : vector<8x32xf32>
    %cst_62 = arith.constant 1.000000e+00 : f32
    %198 = vector.broadcast %cst_62 : f32 to vector<8x32xf32>
    %199 = arith.addf %198, %197 : vector<8x32xf32>
    %200 = arith.divf %198, %199 : vector<8x32xf32>
    %201 = vector.extract_strided_slice %188 {offsets = [0, 64], sizes = [8, 32], strides = [1, 1]} : vector<8x128xf32> to vector<8x32xf32>
    %202 = math.tanh %201 : vector<8x32xf32>
    %203 = vector.extract_strided_slice %188 {offsets = [0, 96], sizes = [8, 32], strides = [1, 1]} : vector<8x128xf32> to vector<8x32xf32>
    %204 = arith.negf %203 : vector<8x32xf32>
    %205 = math.exp %204 : vector<8x32xf32>
    %cst_63 = arith.constant 1.000000e+00 : f32
    %206 = vector.broadcast %cst_63 : f32 to vector<8x32xf32>
    %207 = arith.addf %206, %205 : vector<8x32xf32>
    %208 = arith.divf %206, %207 : vector<8x32xf32>
    %209 = arith.mulf %200, %149 : vector<8x32xf32>
    %210 = arith.mulf %194, %202 : vector<8x32xf32>
    %211 = arith.addf %209, %210 : vector<8x32xf32>
    %212 = math.tanh %211 : vector<8x32xf32>
    %213 = arith.mulf %208, %212 : vector<8x32xf32>
    %c3_i32 = arith.constant 3 : i32
    %214 = arith.index_cast %c3_i32 : i32 to index
    %c0_64 = arith.constant 0 : index
    %c0_65 = arith.constant 0 : index
    %215 = vector.load %arg13[%214, %c0_64, %c0_65] : memref<8x8x128xf32, #tpu.memory_space<vmem>>, vector<1x8x128xf32>
    %216 = vector.shape_cast %215 : vector<1x8x128xf32> to vector<8x128xf32>
    %217 = arith.truncf %182 : vector<8x32xf32> to vector<8x32xbf16>
    %cst_66 = arith.constant dense<0.000000e+00> : vector<8x128xf32>
    %218 = tpu.matmul %217, %14, %cst_66 {dimension_numbers = #tpu.dot_dimension_numbers<[1], [0], [0], [1], [0, 0, 1, 1], [], []>} : vector<8x32xbf16>, vector<32x128xbf16>, vector<8x128xf32> -> vector<8x128xf32>
    %219 = arith.addf %216, %218 : vector<8x128xf32>
    %220 = vector.extract_strided_slice %219 {offsets = [0, 0], sizes = [8, 32], strides = [1, 1]} : vector<8x128xf32> to vector<8x32xf32>
    %221 = arith.negf %220 : vector<8x32xf32>
    %222 = math.exp %221 : vector<8x32xf32>
    %cst_67 = arith.constant 1.000000e+00 : f32
    %223 = vector.broadcast %cst_67 : f32 to vector<8x32xf32>
    %224 = arith.addf %223, %222 : vector<8x32xf32>
    %225 = arith.divf %223, %224 : vector<8x32xf32>
    %226 = vector.extract_strided_slice %219 {offsets = [0, 32], sizes = [8, 32], strides = [1, 1]} : vector<8x128xf32> to vector<8x32xf32>
    %227 = arith.negf %226 : vector<8x32xf32>
    %228 = math.exp %227 : vector<8x32xf32>
    %cst_68 = arith.constant 1.000000e+00 : f32
    %229 = vector.broadcast %cst_68 : f32 to vector<8x32xf32>
    %230 = arith.addf %229, %228 : vector<8x32xf32>
    %231 = arith.divf %229, %230 : vector<8x32xf32>
    %232 = vector.extract_strided_slice %219 {offsets = [0, 64], sizes = [8, 32], strides = [1, 1]} : vector<8x128xf32> to vector<8x32xf32>
    %233 = math.tanh %232 : vector<8x32xf32>
    %234 = vector.extract_strided_slice %219 {offsets = [0, 96], sizes = [8, 32], strides = [1, 1]} : vector<8x128xf32> to vector<8x32xf32>
    %235 = arith.negf %234 : vector<8x32xf32>
    %236 = math.exp %235 : vector<8x32xf32>
    %cst_69 = arith.constant 1.000000e+00 : f32
    %237 = vector.broadcast %cst_69 : f32 to vector<8x32xf32>
    %238 = arith.addf %237, %236 : vector<8x32xf32>
    %239 = arith.divf %237, %238 : vector<8x32xf32>
    %240 = arith.mulf %231, %180 : vector<8x32xf32>
    %241 = arith.mulf %225, %233 : vector<8x32xf32>
    %242 = arith.addf %240, %241 : vector<8x32xf32>
    %243 = math.tanh %242 : vector<8x32xf32>
    %244 = arith.mulf %239, %243 : vector<8x32xf32>
    %245 = arith.truncf %244 : vector<8x32xf32> to vector<8x32xbf16>
    %cst_70 = arith.constant dense<0.000000e+00> : vector<8x128xf32>
    %246 = tpu.matmul %245, %15, %cst_70 {dimension_numbers = #tpu.dot_dimension_numbers<[1], [0], [0], [1], [0, 0, 1, 1], [], []>} : vector<8x32xbf16>, vector<32x128xbf16>, vector<8x128xf32> -> vector<8x128xf32>
    %247 = arith.truncf %213 : vector<8x32xf32> to vector<8x32xbf16>
    %cst_71 = arith.constant dense<0.000000e+00> : vector<8x128xf32>
    %248 = tpu.matmul %247, %16, %cst_71 {dimension_numbers = #tpu.dot_dimension_numbers<[1], [0], [0], [1], [0, 0, 1, 1], [], []>} : vector<8x32xbf16>, vector<32x128xbf16>, vector<8x128xf32> -> vector<8x128xf32>
    %249 = arith.addf %246, %248 : vector<8x128xf32>
    %250 = arith.addf %249, %19 : vector<8x128xf32>
    %251 = vector.extract_strided_slice %250 {offsets = [0, 0], sizes = [8, 32], strides = [1, 1]} : vector<8x128xf32> to vector<8x32xf32>
    %252 = arith.negf %251 : vector<8x32xf32>
    %253 = math.exp %252 : vector<8x32xf32>
    %cst_72 = arith.constant 1.000000e+00 : f32
    %254 = vector.broadcast %cst_72 : f32 to vector<8x32xf32>
    %255 = arith.addf %254, %253 : vector<8x32xf32>
    %256 = arith.divf %254, %255 : vector<8x32xf32>
    %257 = vector.extract_strided_slice %250 {offsets = [0, 32], sizes = [8, 32], strides = [1, 1]} : vector<8x128xf32> to vector<8x32xf32>
    %258 = arith.negf %257 : vector<8x32xf32>
    %259 = math.exp %258 : vector<8x32xf32>
    %cst_73 = arith.constant 1.000000e+00 : f32
    %260 = vector.broadcast %cst_73 : f32 to vector<8x32xf32>
    %261 = arith.addf %260, %259 : vector<8x32xf32>
    %262 = arith.divf %260, %261 : vector<8x32xf32>
    %263 = vector.extract_strided_slice %250 {offsets = [0, 64], sizes = [8, 32], strides = [1, 1]} : vector<8x128xf32> to vector<8x32xf32>
    %264 = math.tanh %263 : vector<8x32xf32>
    %265 = vector.extract_strided_slice %250 {offsets = [0, 96], sizes = [8, 32], strides = [1, 1]} : vector<8x128xf32> to vector<8x32xf32>
    %266 = arith.negf %265 : vector<8x32xf32>
    %267 = math.exp %266 : vector<8x32xf32>
    %cst_74 = arith.constant 1.000000e+00 : f32
    %268 = vector.broadcast %cst_74 : f32 to vector<8x32xf32>
    %269 = arith.addf %268, %267 : vector<8x32xf32>
    %270 = arith.divf %268, %269 : vector<8x32xf32>
    %271 = arith.mulf %262, %211 : vector<8x32xf32>
    %272 = arith.mulf %256, %264 : vector<8x32xf32>
    %273 = arith.addf %271, %272 : vector<8x32xf32>
    %274 = math.tanh %273 : vector<8x32xf32>
    %275 = arith.mulf %270, %274 : vector<8x32xf32>
    %c4_i32 = arith.constant 4 : i32
    %276 = arith.index_cast %c4_i32 : i32 to index
    %c0_75 = arith.constant 0 : index
    %c0_76 = arith.constant 0 : index
    %277 = vector.load %arg13[%276, %c0_75, %c0_76] : memref<8x8x128xf32, #tpu.memory_space<vmem>>, vector<1x8x128xf32>
    %278 = vector.shape_cast %277 : vector<1x8x128xf32> to vector<8x128xf32>
    %279 = arith.truncf %244 : vector<8x32xf32> to vector<8x32xbf16>
    %cst_77 = arith.constant dense<0.000000e+00> : vector<8x128xf32>
    %280 = tpu.matmul %279, %14, %cst_77 {dimension_numbers = #tpu.dot_dimension_numbers<[1], [0], [0], [1], [0, 0, 1, 1], [], []>} : vector<8x32xbf16>, vector<32x128xbf16>, vector<8x128xf32> -> vector<8x128xf32>
    %281 = arith.addf %278, %280 : vector<8x128xf32>
    %282 = vector.extract_strided_slice %281 {offsets = [0, 0], sizes = [8, 32], strides = [1, 1]} : vector<8x128xf32> to vector<8x32xf32>
    %283 = arith.negf %282 : vector<8x32xf32>
    %284 = math.exp %283 : vector<8x32xf32>
    %cst_78 = arith.constant 1.000000e+00 : f32
    %285 = vector.broadcast %cst_78 : f32 to vector<8x32xf32>
    %286 = arith.addf %285, %284 : vector<8x32xf32>
    %287 = arith.divf %285, %286 : vector<8x32xf32>
    %288 = vector.extract_strided_slice %281 {offsets = [0, 32], sizes = [8, 32], strides = [1, 1]} : vector<8x128xf32> to vector<8x32xf32>
    %289 = arith.negf %288 : vector<8x32xf32>
    %290 = math.exp %289 : vector<8x32xf32>
    %cst_79 = arith.constant 1.000000e+00 : f32
    %291 = vector.broadcast %cst_79 : f32 to vector<8x32xf32>
    %292 = arith.addf %291, %290 : vector<8x32xf32>
    %293 = arith.divf %291, %292 : vector<8x32xf32>
    %294 = vector.extract_strided_slice %281 {offsets = [0, 64], sizes = [8, 32], strides = [1, 1]} : vector<8x128xf32> to vector<8x32xf32>
    %295 = math.tanh %294 : vector<8x32xf32>
    %296 = vector.extract_strided_slice %281 {offsets = [0, 96], sizes = [8, 32], strides = [1, 1]} : vector<8x128xf32> to vector<8x32xf32>
    %297 = arith.negf %296 : vector<8x32xf32>
    %298 = math.exp %297 : vector<8x32xf32>
    %cst_80 = arith.constant 1.000000e+00 : f32
    %299 = vector.broadcast %cst_80 : f32 to vector<8x32xf32>
    %300 = arith.addf %299, %298 : vector<8x32xf32>
    %301 = arith.divf %299, %300 : vector<8x32xf32>
    %302 = arith.mulf %293, %242 : vector<8x32xf32>
    %303 = arith.mulf %287, %295 : vector<8x32xf32>
    %304 = arith.addf %302, %303 : vector<8x32xf32>
    %305 = math.tanh %304 : vector<8x32xf32>
    %306 = arith.mulf %301, %305 : vector<8x32xf32>
    %307 = arith.truncf %306 : vector<8x32xf32> to vector<8x32xbf16>
    %cst_81 = arith.constant dense<0.000000e+00> : vector<8x128xf32>
    %308 = tpu.matmul %307, %15, %cst_81 {dimension_numbers = #tpu.dot_dimension_numbers<[1], [0], [0], [1], [0, 0, 1, 1], [], []>} : vector<8x32xbf16>, vector<32x128xbf16>, vector<8x128xf32> -> vector<8x128xf32>
    %309 = arith.truncf %275 : vector<8x32xf32> to vector<8x32xbf16>
    %cst_82 = arith.constant dense<0.000000e+00> : vector<8x128xf32>
    %310 = tpu.matmul %309, %16, %cst_82 {dimension_numbers = #tpu.dot_dimension_numbers<[1], [0], [0], [1], [0, 0, 1, 1], [], []>} : vector<8x32xbf16>, vector<32x128xbf16>, vector<8x128xf32> -> vector<8x128xf32>
    %311 = arith.addf %308, %310 : vector<8x128xf32>
    %312 = arith.addf %311, %19 : vector<8x128xf32>
    %313 = vector.extract_strided_slice %312 {offsets = [0, 0], sizes = [8, 32], strides = [1, 1]} : vector<8x128xf32> to vector<8x32xf32>
    %314 = arith.negf %313 : vector<8x32xf32>
    %315 = math.exp %314 : vector<8x32xf32>
    %cst_83 = arith.constant 1.000000e+00 : f32
    %316 = vector.broadcast %cst_83 : f32 to vector<8x32xf32>
    %317 = arith.addf %316, %315 : vector<8x32xf32>
    %318 = arith.divf %316, %317 : vector<8x32xf32>
    %319 = vector.extract_strided_slice %312 {offsets = [0, 32], sizes = [8, 32], strides = [1, 1]} : vector<8x128xf32> to vector<8x32xf32>
    %320 = arith.negf %319 : vector<8x32xf32>
    %321 = math.exp %320 : vector<8x32xf32>
    %cst_84 = arith.constant 1.000000e+00 : f32
    %322 = vector.broadcast %cst_84 : f32 to vector<8x32xf32>
    %323 = arith.addf %322, %321 : vector<8x32xf32>
    %324 = arith.divf %322, %323 : vector<8x32xf32>
    %325 = vector.extract_strided_slice %312 {offsets = [0, 64], sizes = [8, 32], strides = [1, 1]} : vector<8x128xf32> to vector<8x32xf32>
    %326 = math.tanh %325 : vector<8x32xf32>
    %327 = vector.extract_strided_slice %312 {offsets = [0, 96], sizes = [8, 32], strides = [1, 1]} : vector<8x128xf32> to vector<8x32xf32>
    %328 = arith.negf %327 : vector<8x32xf32>
    %329 = math.exp %328 : vector<8x32xf32>
    %cst_85 = arith.constant 1.000000e+00 : f32
    %330 = vector.broadcast %cst_85 : f32 to vector<8x32xf32>
    %331 = arith.addf %330, %329 : vector<8x32xf32>
    %332 = arith.divf %330, %331 : vector<8x32xf32>
    %333 = arith.mulf %324, %273 : vector<8x32xf32>
    %334 = arith.mulf %318, %326 : vector<8x32xf32>
    %335 = arith.addf %333, %334 : vector<8x32xf32>
    %336 = math.tanh %335 : vector<8x32xf32>
    %337 = arith.mulf %332, %336 : vector<8x32xf32>
    %c5_i32 = arith.constant 5 : i32
    %338 = arith.index_cast %c5_i32 : i32 to index
    %c0_86 = arith.constant 0 : index
    %c0_87 = arith.constant 0 : index
    %339 = vector.load %arg13[%338, %c0_86, %c0_87] : memref<8x8x128xf32, #tpu.memory_space<vmem>>, vector<1x8x128xf32>
    %340 = vector.shape_cast %339 : vector<1x8x128xf32> to vector<8x128xf32>
    %341 = arith.truncf %306 : vector<8x32xf32> to vector<8x32xbf16>
    %cst_88 = arith.constant dense<0.000000e+00> : vector<8x128xf32>
    %342 = tpu.matmul %341, %14, %cst_88 {dimension_numbers = #tpu.dot_dimension_numbers<[1], [0], [0], [1], [0, 0, 1, 1], [], []>} : vector<8x32xbf16>, vector<32x128xbf16>, vector<8x128xf32> -> vector<8x128xf32>
    %343 = arith.addf %340, %342 : vector<8x128xf32>
    %344 = vector.extract_strided_slice %343 {offsets = [0, 0], sizes = [8, 32], strides = [1, 1]} : vector<8x128xf32> to vector<8x32xf32>
    %345 = arith.negf %344 : vector<8x32xf32>
    %346 = math.exp %345 : vector<8x32xf32>
    %cst_89 = arith.constant 1.000000e+00 : f32
    %347 = vector.broadcast %cst_89 : f32 to vector<8x32xf32>
    %348 = arith.addf %347, %346 : vector<8x32xf32>
    %349 = arith.divf %347, %348 : vector<8x32xf32>
    %350 = vector.extract_strided_slice %343 {offsets = [0, 32], sizes = [8, 32], strides = [1, 1]} : vector<8x128xf32> to vector<8x32xf32>
    %351 = arith.negf %350 : vector<8x32xf32>
    %352 = math.exp %351 : vector<8x32xf32>
    %cst_90 = arith.constant 1.000000e+00 : f32
    %353 = vector.broadcast %cst_90 : f32 to vector<8x32xf32>
    %354 = arith.addf %353, %352 : vector<8x32xf32>
    %355 = arith.divf %353, %354 : vector<8x32xf32>
    %356 = vector.extract_strided_slice %343 {offsets = [0, 64], sizes = [8, 32], strides = [1, 1]} : vector<8x128xf32> to vector<8x32xf32>
    %357 = math.tanh %356 : vector<8x32xf32>
    %358 = vector.extract_strided_slice %343 {offsets = [0, 96], sizes = [8, 32], strides = [1, 1]} : vector<8x128xf32> to vector<8x32xf32>
    %359 = arith.negf %358 : vector<8x32xf32>
    %360 = math.exp %359 : vector<8x32xf32>
    %cst_91 = arith.constant 1.000000e+00 : f32
    %361 = vector.broadcast %cst_91 : f32 to vector<8x32xf32>
    %362 = arith.addf %361, %360 : vector<8x32xf32>
    %363 = arith.divf %361, %362 : vector<8x32xf32>
    %364 = arith.mulf %355, %304 : vector<8x32xf32>
    %365 = arith.mulf %349, %357 : vector<8x32xf32>
    %366 = arith.addf %364, %365 : vector<8x32xf32>
    %367 = math.tanh %366 : vector<8x32xf32>
    %368 = arith.mulf %363, %367 : vector<8x32xf32>
    %369 = arith.truncf %368 : vector<8x32xf32> to vector<8x32xbf16>
    %cst_92 = arith.constant dense<0.000000e+00> : vector<8x128xf32>
    %370 = tpu.matmul %369, %15, %cst_92 {dimension_numbers = #tpu.dot_dimension_numbers<[1], [0], [0], [1], [0, 0, 1, 1], [], []>} : vector<8x32xbf16>, vector<32x128xbf16>, vector<8x128xf32> -> vector<8x128xf32>
    %371 = arith.truncf %337 : vector<8x32xf32> to vector<8x32xbf16>
    %cst_93 = arith.constant dense<0.000000e+00> : vector<8x128xf32>
    %372 = tpu.matmul %371, %16, %cst_93 {dimension_numbers = #tpu.dot_dimension_numbers<[1], [0], [0], [1], [0, 0, 1, 1], [], []>} : vector<8x32xbf16>, vector<32x128xbf16>, vector<8x128xf32> -> vector<8x128xf32>
    %373 = arith.addf %370, %372 : vector<8x128xf32>
    %374 = arith.addf %373, %19 : vector<8x128xf32>
    %375 = vector.extract_strided_slice %374 {offsets = [0, 0], sizes = [8, 32], strides = [1, 1]} : vector<8x128xf32> to vector<8x32xf32>
    %376 = arith.negf %375 : vector<8x32xf32>
    %377 = math.exp %376 : vector<8x32xf32>
    %cst_94 = arith.constant 1.000000e+00 : f32
    %378 = vector.broadcast %cst_94 : f32 to vector<8x32xf32>
    %379 = arith.addf %378, %377 : vector<8x32xf32>
    %380 = arith.divf %378, %379 : vector<8x32xf32>
    %381 = vector.extract_strided_slice %374 {offsets = [0, 32], sizes = [8, 32], strides = [1, 1]} : vector<8x128xf32> to vector<8x32xf32>
    %382 = arith.negf %381 : vector<8x32xf32>
    %383 = math.exp %382 : vector<8x32xf32>
    %cst_95 = arith.constant 1.000000e+00 : f32
    %384 = vector.broadcast %cst_95 : f32 to vector<8x32xf32>
    %385 = arith.addf %384, %383 : vector<8x32xf32>
    %386 = arith.divf %384, %385 : vector<8x32xf32>
    %387 = vector.extract_strided_slice %374 {offsets = [0, 64], sizes = [8, 32], strides = [1, 1]} : vector<8x128xf32> to vector<8x32xf32>
    %388 = math.tanh %387 : vector<8x32xf32>
    %389 = vector.extract_strided_slice %374 {offsets = [0, 96], sizes = [8, 32], strides = [1, 1]} : vector<8x128xf32> to vector<8x32xf32>
    %390 = arith.negf %389 : vector<8x32xf32>
    %391 = math.exp %390 : vector<8x32xf32>
    %cst_96 = arith.constant 1.000000e+00 : f32
    %392 = vector.broadcast %cst_96 : f32 to vector<8x32xf32>
    %393 = arith.addf %392, %391 : vector<8x32xf32>
    %394 = arith.divf %392, %393 : vector<8x32xf32>
    %395 = arith.mulf %386, %335 : vector<8x32xf32>
    %396 = arith.mulf %380, %388 : vector<8x32xf32>
    %397 = arith.addf %395, %396 : vector<8x32xf32>
    %398 = math.tanh %397 : vector<8x32xf32>
    %399 = arith.mulf %394, %398 : vector<8x32xf32>
    %c6_i32 = arith.constant 6 : i32
    %400 = arith.index_cast %c6_i32 : i32 to index
    %c0_97 = arith.constant 0 : index
    %c0_98 = arith.constant 0 : index
    %401 = vector.load %arg13[%400, %c0_97, %c0_98] : memref<8x8x128xf32, #tpu.memory_space<vmem>>, vector<1x8x128xf32>
    %402 = vector.shape_cast %401 : vector<1x8x128xf32> to vector<8x128xf32>
    %403 = arith.truncf %368 : vector<8x32xf32> to vector<8x32xbf16>
    %cst_99 = arith.constant dense<0.000000e+00> : vector<8x128xf32>
    %404 = tpu.matmul %403, %14, %cst_99 {dimension_numbers = #tpu.dot_dimension_numbers<[1], [0], [0], [1], [0, 0, 1, 1], [], []>} : vector<8x32xbf16>, vector<32x128xbf16>, vector<8x128xf32> -> vector<8x128xf32>
    %405 = arith.addf %402, %404 : vector<8x128xf32>
    %406 = vector.extract_strided_slice %405 {offsets = [0, 0], sizes = [8, 32], strides = [1, 1]} : vector<8x128xf32> to vector<8x32xf32>
    %407 = arith.negf %406 : vector<8x32xf32>
    %408 = math.exp %407 : vector<8x32xf32>
    %cst_100 = arith.constant 1.000000e+00 : f32
    %409 = vector.broadcast %cst_100 : f32 to vector<8x32xf32>
    %410 = arith.addf %409, %408 : vector<8x32xf32>
    %411 = arith.divf %409, %410 : vector<8x32xf32>
    %412 = vector.extract_strided_slice %405 {offsets = [0, 32], sizes = [8, 32], strides = [1, 1]} : vector<8x128xf32> to vector<8x32xf32>
    %413 = arith.negf %412 : vector<8x32xf32>
    %414 = math.exp %413 : vector<8x32xf32>
    %cst_101 = arith.constant 1.000000e+00 : f32
    %415 = vector.broadcast %cst_101 : f32 to vector<8x32xf32>
    %416 = arith.addf %415, %414 : vector<8x32xf32>
    %417 = arith.divf %415, %416 : vector<8x32xf32>
    %418 = vector.extract_strided_slice %405 {offsets = [0, 64], sizes = [8, 32], strides = [1, 1]} : vector<8x128xf32> to vector<8x32xf32>
    %419 = math.tanh %418 : vector<8x32xf32>
    %420 = vector.extract_strided_slice %405 {offsets = [0, 96], sizes = [8, 32], strides = [1, 1]} : vector<8x128xf32> to vector<8x32xf32>
    %421 = arith.negf %420 : vector<8x32xf32>
    %422 = math.exp %421 : vector<8x32xf32>
    %cst_102 = arith.constant 1.000000e+00 : f32
    %423 = vector.broadcast %cst_102 : f32 to vector<8x32xf32>
    %424 = arith.addf %423, %422 : vector<8x32xf32>
    %425 = arith.divf %423, %424 : vector<8x32xf32>
    %426 = arith.mulf %417, %366 : vector<8x32xf32>
    %427 = arith.mulf %411, %419 : vector<8x32xf32>
    %428 = arith.addf %426, %427 : vector<8x32xf32>
    %429 = math.tanh %428 : vector<8x32xf32>
    %430 = arith.mulf %425, %429 : vector<8x32xf32>
    %431 = arith.truncf %430 : vector<8x32xf32> to vector<8x32xbf16>
    %cst_103 = arith.constant dense<0.000000e+00> : vector<8x128xf32>
    %432 = tpu.matmul %431, %15, %cst_103 {dimension_numbers = #tpu.dot_dimension_numbers<[1], [0], [0], [1], [0, 0, 1, 1], [], []>} : vector<8x32xbf16>, vector<32x128xbf16>, vector<8x128xf32> -> vector<8x128xf32>
    %433 = arith.truncf %399 : vector<8x32xf32> to vector<8x32xbf16>
    %cst_104 = arith.constant dense<0.000000e+00> : vector<8x128xf32>
    %434 = tpu.matmul %433, %16, %cst_104 {dimension_numbers = #tpu.dot_dimension_numbers<[1], [0], [0], [1], [0, 0, 1, 1], [], []>} : vector<8x32xbf16>, vector<32x128xbf16>, vector<8x128xf32> -> vector<8x128xf32>
    %435 = arith.addf %432, %434 : vector<8x128xf32>
    %436 = arith.addf %435, %19 : vector<8x128xf32>
    %437 = vector.extract_strided_slice %436 {offsets = [0, 0], sizes = [8, 32], strides = [1, 1]} : vector<8x128xf32> to vector<8x32xf32>
    %438 = arith.negf %437 : vector<8x32xf32>
    %439 = math.exp %438 : vector<8x32xf32>
    %cst_105 = arith.constant 1.000000e+00 : f32
    %440 = vector.broadcast %cst_105 : f32 to vector<8x32xf32>
    %441 = arith.addf %440, %439 : vector<8x32xf32>
    %442 = arith.divf %440, %441 : vector<8x32xf32>
    %443 = vector.extract_strided_slice %436 {offsets = [0, 32], sizes = [8, 32], strides = [1, 1]} : vector<8x128xf32> to vector<8x32xf32>
    %444 = arith.negf %443 : vector<8x32xf32>
    %445 = math.exp %444 : vector<8x32xf32>
    %cst_106 = arith.constant 1.000000e+00 : f32
    %446 = vector.broadcast %cst_106 : f32 to vector<8x32xf32>
    %447 = arith.addf %446, %445 : vector<8x32xf32>
    %448 = arith.divf %446, %447 : vector<8x32xf32>
    %449 = vector.extract_strided_slice %436 {offsets = [0, 64], sizes = [8, 32], strides = [1, 1]} : vector<8x128xf32> to vector<8x32xf32>
    %450 = math.tanh %449 : vector<8x32xf32>
    %451 = vector.extract_strided_slice %436 {offsets = [0, 96], sizes = [8, 32], strides = [1, 1]} : vector<8x128xf32> to vector<8x32xf32>
    %452 = arith.negf %451 : vector<8x32xf32>
    %453 = math.exp %452 : vector<8x32xf32>
    %cst_107 = arith.constant 1.000000e+00 : f32
    %454 = vector.broadcast %cst_107 : f32 to vector<8x32xf32>
    %455 = arith.addf %454, %453 : vector<8x32xf32>
    %456 = arith.divf %454, %455 : vector<8x32xf32>
    %457 = arith.mulf %448, %397 : vector<8x32xf32>
    %458 = arith.mulf %442, %450 : vector<8x32xf32>
    %459 = arith.addf %457, %458 : vector<8x32xf32>
    %460 = math.tanh %459 : vector<8x32xf32>
    %461 = arith.mulf %456, %460 : vector<8x32xf32>
    %c7_i32 = arith.constant 7 : i32
    %462 = arith.index_cast %c7_i32 : i32 to index
    %c0_108 = arith.constant 0 : index
    %c0_109 = arith.constant 0 : index
    %463 = vector.load %arg13[%462, %c0_108, %c0_109] : memref<8x8x128xf32, #tpu.memory_space<vmem>>, vector<1x8x128xf32>
    %464 = vector.shape_cast %463 : vector<1x8x128xf32> to vector<8x128xf32>
    %465 = arith.truncf %430 : vector<8x32xf32> to vector<8x32xbf16>
    %cst_110 = arith.constant dense<0.000000e+00> : vector<8x128xf32>
    %466 = tpu.matmul %465, %14, %cst_110 {dimension_numbers = #tpu.dot_dimension_numbers<[1], [0], [0], [1], [0, 0, 1, 1], [], []>} : vector<8x32xbf16>, vector<32x128xbf16>, vector<8x128xf32> -> vector<8x128xf32>
    %467 = arith.addf %464, %466 : vector<8x128xf32>
    %468 = vector.extract_strided_slice %467 {offsets = [0, 0], sizes = [8, 32], strides = [1, 1]} : vector<8x128xf32> to vector<8x32xf32>
    %469 = arith.negf %468 : vector<8x32xf32>
    %470 = math.exp %469 : vector<8x32xf32>
    %cst_111 = arith.constant 1.000000e+00 : f32
    %471 = vector.broadcast %cst_111 : f32 to vector<8x32xf32>
    %472 = arith.addf %471, %470 : vector<8x32xf32>
    %473 = arith.divf %471, %472 : vector<8x32xf32>
    %474 = vector.extract_strided_slice %467 {offsets = [0, 32], sizes = [8, 32], strides = [1, 1]} : vector<8x128xf32> to vector<8x32xf32>
    %475 = arith.negf %474 : vector<8x32xf32>
    %476 = math.exp %475 : vector<8x32xf32>
    %cst_112 = arith.constant 1.000000e+00 : f32
    %477 = vector.broadcast %cst_112 : f32 to vector<8x32xf32>
    %478 = arith.addf %477, %476 : vector<8x32xf32>
    %479 = arith.divf %477, %478 : vector<8x32xf32>
    %480 = vector.extract_strided_slice %467 {offsets = [0, 64], sizes = [8, 32], strides = [1, 1]} : vector<8x128xf32> to vector<8x32xf32>
    %481 = math.tanh %480 : vector<8x32xf32>
    %482 = vector.extract_strided_slice %467 {offsets = [0, 96], sizes = [8, 32], strides = [1, 1]} : vector<8x128xf32> to vector<8x32xf32>
    %483 = arith.negf %482 : vector<8x32xf32>
    %484 = math.exp %483 : vector<8x32xf32>
    %cst_113 = arith.constant 1.000000e+00 : f32
    %485 = vector.broadcast %cst_113 : f32 to vector<8x32xf32>
    %486 = arith.addf %485, %484 : vector<8x32xf32>
    %487 = arith.divf %485, %486 : vector<8x32xf32>
    %488 = arith.mulf %479, %428 : vector<8x32xf32>
    %489 = arith.mulf %473, %481 : vector<8x32xf32>
    %490 = arith.addf %488, %489 : vector<8x32xf32>
    %491 = math.tanh %490 : vector<8x32xf32>
    %492 = arith.mulf %487, %491 : vector<8x32xf32>
    %493 = arith.truncf %492 : vector<8x32xf32> to vector<8x32xbf16>
    %cst_114 = arith.constant dense<0.000000e+00> : vector<8x128xf32>
    %494 = tpu.matmul %493, %15, %cst_114 {dimension_numbers = #tpu.dot_dimension_numbers<[1], [0], [0], [1], [0, 0, 1, 1], [], []>} : vector<8x32xbf16>, vector<32x128xbf16>, vector<8x128xf32> -> vector<8x128xf32>
    %495 = arith.truncf %461 : vector<8x32xf32> to vector<8x32xbf16>
    %cst_115 = arith.constant dense<0.000000e+00> : vector<8x128xf32>
    %496 = tpu.matmul %495, %16, %cst_115 {dimension_numbers = #tpu.dot_dimension_numbers<[1], [0], [0], [1], [0, 0, 1, 1], [], []>} : vector<8x32xbf16>, vector<32x128xbf16>, vector<8x128xf32> -> vector<8x128xf32>
    %497 = arith.addf %494, %496 : vector<8x128xf32>
    %498 = arith.addf %497, %19 : vector<8x128xf32>
    %499 = vector.extract_strided_slice %498 {offsets = [0, 0], sizes = [8, 32], strides = [1, 1]} : vector<8x128xf32> to vector<8x32xf32>
    %500 = arith.negf %499 : vector<8x32xf32>
    %501 = math.exp %500 : vector<8x32xf32>
    %cst_116 = arith.constant 1.000000e+00 : f32
    %502 = vector.broadcast %cst_116 : f32 to vector<8x32xf32>
    %503 = arith.addf %502, %501 : vector<8x32xf32>
    %504 = arith.divf %502, %503 : vector<8x32xf32>
    %505 = vector.extract_strided_slice %498 {offsets = [0, 32], sizes = [8, 32], strides = [1, 1]} : vector<8x128xf32> to vector<8x32xf32>
    %506 = arith.negf %505 : vector<8x32xf32>
    %507 = math.exp %506 : vector<8x32xf32>
    %cst_117 = arith.constant 1.000000e+00 : f32
    %508 = vector.broadcast %cst_117 : f32 to vector<8x32xf32>
    %509 = arith.addf %508, %507 : vector<8x32xf32>
    %510 = arith.divf %508, %509 : vector<8x32xf32>
    %511 = vector.extract_strided_slice %498 {offsets = [0, 64], sizes = [8, 32], strides = [1, 1]} : vector<8x128xf32> to vector<8x32xf32>
    %512 = math.tanh %511 : vector<8x32xf32>
    %513 = vector.extract_strided_slice %498 {offsets = [0, 96], sizes = [8, 32], strides = [1, 1]} : vector<8x128xf32> to vector<8x32xf32>
    %514 = arith.negf %513 : vector<8x32xf32>
    %515 = math.exp %514 : vector<8x32xf32>
    %cst_118 = arith.constant 1.000000e+00 : f32
    %516 = vector.broadcast %cst_118 : f32 to vector<8x32xf32>
    %517 = arith.addf %516, %515 : vector<8x32xf32>
    %518 = arith.divf %516, %517 : vector<8x32xf32>
    %519 = arith.mulf %510, %459 : vector<8x32xf32>
    %520 = arith.mulf %504, %512 : vector<8x32xf32>
    %521 = arith.addf %519, %520 : vector<8x32xf32>
    %522 = math.tanh %521 : vector<8x32xf32>
    %523 = arith.mulf %518, %522 : vector<8x32xf32>
    %c8_i32 = arith.constant 8 : i32
    %c0_119 = arith.constant 0 : index
    %c0_120 = arith.constant 0 : index
    %c0_121 = arith.constant 0 : index
    %524 = vector.load %arg11[%c0_119, %c0_120, %c0_121] : memref<2x8x32xf32, #tpu.memory_space<vmem>>, vector<1x8x32xf32>
    %525 = vector.shape_cast %524 : vector<1x8x32xf32> to vector<8x32xf32>
    %526 = vector.shape_cast %492 : vector<8x32xf32> to vector<1x8x32xf32>
    tpu.vector_store %arg11[%c0_119, %c0_120, %c0_121], %526 {strides = array<i32>} : memref<2x8x32xf32, #tpu.memory_space<vmem>>, vector<1x8x32xf32>,
    %c0_122 = arith.constant 0 : index
    %c0_123 = arith.constant 0 : index
    %c0_124 = arith.constant 0 : index
    %527 = vector.load %arg12[%c0_122, %c0_123, %c0_124] : memref<2x8x32xf32, #tpu.memory_space<vmem>>, vector<1x8x32xf32>
    %528 = vector.shape_cast %527 : vector<1x8x32xf32> to vector<8x32xf32>
    %529 = vector.shape_cast %490 : vector<8x32xf32> to vector<1x8x32xf32>
    tpu.vector_store %arg12[%c0_122, %c0_123, %c0_124], %529 {strides = array<i32>} : memref<2x8x32xf32, #tpu.memory_space<vmem>>, vector<1x8x32xf32>,
    %c1_125 = arith.constant 1 : index
    %c0_126 = arith.constant 0 : index
    %c0_127 = arith.constant 0 : index
    %530 = vector.load %arg11[%c1_125, %c0_126, %c0_127] : memref<2x8x32xf32, #tpu.memory_space<vmem>>, vector<1x8x32xf32>
    %531 = vector.shape_cast %530 : vector<1x8x32xf32> to vector<8x32xf32>
    %532 = vector.shape_cast %523 : vector<8x32xf32> to vector<1x8x32xf32>
    tpu.vector_store %arg11[%c1_125, %c0_126, %c0_127], %532 {strides = array<i32>} : memref<2x8x32xf32, #tpu.memory_space<vmem>>, vector<1x8x32xf32>,
    %c1_128 = arith.constant 1 : index
    %c0_129 = arith.constant 0 : index
    %c0_130 = arith.constant 0 : index
    %533 = vector.load %arg12[%c1_128, %c0_129, %c0_130] : memref<2x8x32xf32, #tpu.memory_space<vmem>>, vector<1x8x32xf32>
    %534 = vector.shape_cast %533 : vector<1x8x32xf32> to vector<8x32xf32>
    %535 = vector.shape_cast %521 : vector<8x32xf32> to vector<1x8x32xf32>
    tpu.vector_store %arg12[%c1_128, %c0_129, %c0_130], %535 {strides = array<i32>} : memref<2x8x32xf32, #tpu.memory_space<vmem>>, vector<1x8x32xf32>,
    return
  }
  func.func @transform_0(%arg0: i32, %arg1: i32) -> (i32, i32, i32, i32) {
    %c0_i32 = arith.constant 0 : i32
    %c0_i32_0 = arith.constant 0 : i32
    %c0_i32_1 = arith.constant 0 : i32
    return %arg0, %arg1, %c0_i32, %c0_i32_0 : i32, i32, i32, i32
  }
  func.func @transform_1(%arg0: i32, %arg1: i32) -> (i32, i32, i32) {
    %c0_i32 = arith.constant 0 : i32
    %c0_i32_0 = arith.constant 0 : i32
    %c0_i32_1 = arith.constant 0 : i32
    return %c0_i32, %arg0, %c0_i32_0 : i32, i32, i32
  }
  func.func @transform_2(%arg0: i32, %arg1: i32) -> (i32, i32, i32) {
    %c0_i32 = arith.constant 0 : i32
    %c0_i32_0 = arith.constant 0 : i32
    %c0_i32_1 = arith.constant 0 : i32
    return %c0_i32, %arg0, %c0_i32_0 : i32, i32, i32
  }
  func.func @transform_3(%arg0: i32, %arg1: i32) -> (i32, i32) {
    %c0_i32 = arith.constant 0 : i32
    %c0_i32_0 = arith.constant 0 : i32
    %c0_i32_1 = arith.constant 0 : i32
    return %c0_i32, %c0_i32_0 : i32, i32
  }
  func.func @transform_4(%arg0: i32, %arg1: i32) -> (i32, i32) {
    %c0_i32 = arith.constant 0 : i32
    %c0_i32_0 = arith.constant 0 : i32
    %c0_i32_1 = arith.constant 0 : i32
    return %c0_i32, %c0_i32_0 : i32, i32
  }
  func.func @transform_5(%arg0: i32, %arg1: i32) -> (i32, i32) {
    %c0_i32 = arith.constant 0 : i32
    %c0_i32_0 = arith.constant 0 : i32
    %c0_i32_1 = arith.constant 0 : i32
    return %c0_i32, %c0_i32_0 : i32, i32
  }
  func.func @transform_6(%arg0: i32, %arg1: i32) -> (i32, i32) {
    %c0_i32 = arith.constant 0 : i32
    %c0_i32_0 = arith.constant 0 : i32
    %c0_i32_1 = arith.constant 0 : i32
    return %c0_i32, %c0_i32_0 : i32, i32
  }
  func.func @transform_7(%arg0: i32, %arg1: i32) -> (i32, i32) {
    %c0_i32 = arith.constant 0 : i32
    %c0_i32_0 = arith.constant 0 : i32
    %c0_i32_1 = arith.constant 0 : i32
    return %c0_i32, %c0_i32_0 : i32, i32
  }
  func.func @transform_8(%arg0: i32, %arg1: i32) -> (i32, i32) {
    %c0_i32 = arith.constant 0 : i32
    %c0_i32_0 = arith.constant 0 : i32
    %c0_i32_1 = arith.constant 0 : i32
    return %c0_i32, %c0_i32_0 : i32, i32
  }
  func.func @transform_9(%arg0: i32, %arg1: i32) -> (i32, i32, i32) {
    %c0_i32 = arith.constant 0 : i32
    %c0_i32_0 = arith.constant 0 : i32
    %c0_i32_1 = arith.constant 0 : i32
    return %c0_i32, %arg0, %c0_i32_0 : i32, i32, i32
  }
  func.func @transform_10(%arg0: i32, %arg1: i32) -> (i32, i32, i32) {
    %c0_i32 = arith.constant 0 : i32
    %c0_i32_0 = arith.constant 0 : i32
    %c0_i32_1 = arith.constant 0 : i32
    return %c0_i32, %arg0, %c0_i32_0 : i32, i32, i32
  }
}

</mosaic_0001>

<bundles_post_ra>
// kernel: sentiment_rnn_forward.1
= control target key start
LH: loop header
LB: loop body
LE: loop exit
PB: predicated region body
PF: predicated region fallthrough
CT: control target
= control target key end

     0   :  { %v2275_v1 = vmov 0.0   ;;  %vm2276_vm0 = vmmov 0   ;;  %vm41_vm1 = vcmask 261120   ;;  %s2279_s13 = smov 96   ;;  %s2799_s3 = inlined_call_operand.vmem [shape: bf16[32,128], index: 3, kind: input, shape index: {}]   ;;  %s2800_s4 = inlined_call_operand.vmem [shape: bf16[32,128], index: 4, kind: input, shape index: {}]   ;;  %s2801_s0 = inlined_call_operand.vmem [shape: bf16[1,8,8,32], index: 0, kind: input, shape index: {}]   ;;  %s2802_s1 = inlined_call_operand.vmem [shape: f32[2,8,32], index: 1, kind: input, shape index: {}]   ;;  %s2803_s9 = inlined_call_operand.vmem [shape: f32[2,8,32], index: 9, kind: output, shape index: {0}]   ;;  %s2804_s2 = inlined_call_operand.vmem [shape: f32[2,8,32], index: 2, kind: input, shape index: {}]   ;;  %s2805_s10 = inlined_call_operand.vmem [shape: f32[2,8,32], index: 10, kind: output, shape index: {1}]   ;;  %s2806_s5 = inlined_call_operand.vmem [shape: f32[1,128], index: 5, kind: input, shape index: {}]   ;;  %s2807_s7 = inlined_call_operand.vmem [shape: bf16[32,128], index: 7, kind: input, shape index: {}]   ;;  %s2808_s6 = inlined_call_operand.vmem [shape: bf16[32,128], index: 6, kind: input, shape index: {}]   ;;  %s2809_s8 = inlined_call_operand.vmem [shape: f32[1,128], index: 8, kind: input, shape index: {}]  }
   0x1   :  { %v2127_v0 = vld [vmem:[%s2799_s3] sm:$0xff]   ;;  %1930 = vmatprep.subr.bf16.mxu1 %v2275_v1  ;;  %1934 = vmatprep.mubr.msk.bf16.mxu1 %vm2276_vm0, %v2275_v1  ;;  %v2129_v3 = vld [vmem:[%s2799_s3 + $0x8] sm:$0xff]   ;;  %s2278_s3 = smov 32   ;;  %v2135_v36 = vld [vmem:[%s2801_s0 + $0x10] sm:$0xff]  }
   0x2   :  { %v2344_v2 = vld [vmem:[%s2800_s4] sm:$0xff]   ;;  %1918 = vmatprep.subr.bf16.mxu0 %v2127_v0  ;;  %v2353_v4 = vld [vmem:[%s2800_s4 + $0x8] sm:$0xff]   ;;  %v2137_v37 = vld [vmem:[%s2801_s0 + $0x18] sm:$0xff]  }
   0x3   :  { %1919 = vmatpush3.bf16.msra.mxu0 %v2127_v0  ;;  %1931 = vmatpush3.bf16.msra.mxu1 %v2344_v2  ;;  %v2131_v5 = vld [vmem:[%s2801_s0] sm:$0xff]   ;;  %v2132_v6 = vld [vmem:[%s2801_s0 + $0x8] sm:$0xff]  }
   0x4   :  { %1920 = vmatprep.subr.bf16.mxu0 %v2129_v3  ;;  %1932 = vmatprep.subr.bf16.mxu1 %v2275_v1  ;;  %v39_v7 = vld [vmem:[%s2802_s1] sm:$0xff]  ;;  %v40_v8 = vld [vmem:[%s2802_s1 + $0x8] sm:$0xff] }
   0x5   :  { %1922 = vmatprep.mubr.msk.bf16.mxu0 %vm41_vm1, %v2131_v5  ;;  %42 = vst.msk [vmem:[%s2803_s9] sm:$0xff] %vm41_vm1, %v39_v7  ;;  %43 = vst.msk [vmem:[%s2803_s9 + $0x8] sm:$0xff] %vm41_vm1, %v40_v8  ;;  %v44_v11 = vld [vmem:[%s2804_s2] sm:$0xff]  ;;  %v45_v12 = vld [vmem:[%s2804_s2 + $0x8] sm:$0xff]  ;;  %s2277_s2 = smov 64  }
   0x6   :  { %46 = vst.msk [vmem:[%s2805_s10] sm:$0xff] %vm41_vm1, %v44_v11  ;;  %47 = vst.msk [vmem:[%s2805_s10 + $0x8] sm:$0xff] %vm41_vm1, %v45_v12  ;;  %v2406_v14 = vld [vmem:[%s2806_s5] ss:$0 sm:$0xff]  ;;  %v2446_v41 = vld [vmem:[%s2807_s7 + $0x8] sm:$0xff]  }
   0x7   :  { %1921 = vmatpush3.bf16.msra.mxu0 %v2129_v3  ;;  %1933 = vmatpush3.bf16.msra.mxu1 %v2353_v4  ;;  %v2431_v38 = vld [vmem:[%s2807_s7] sm:$0xff]   ;;  %v2454_v42 = vld [vmem:[%s2808_s6 + $0x8] sm:$0xff]  }
   0x8   :  { %1938 = vmatprep.subr.bf16.mxu1 %v2275_v1  ;;  %1946 = vmatprep.subr.bf16.mxu0 %v2275_v1  ;;  %v2439_v40 = vld [vmem:[%s2808_s6] sm:$0xff]  }
   0x9   :  { %v2499_v58 = vld [vmem:[%s2809_s8] ss:$0 sm:$0xff] }
   0xa   :  { %1923 = vmatmul.mubr.msk.bf16.vlgmr.msra.gmra.mrb[0].mxu0 %vm41_vm1, %v2132_v6 }
   0xb   :  { %1926 = vmatprep.mubr.msk.bf16.mxu0 %vm41_vm1, %v2135_v36  ;;  %1947 = vmatpush3.bf16.msra.mxu0 %v2439_v40 }
   0xc   :  { %v212_v9 = vld [vmem:[%s2803_s9] sm:$0xff]  ;;  %v1790_v39 = vld [vmem:[%s2803_s9 + $0x8] sm:$0xff]  ;;  %1948 = vmatprep.subr.bf16.mxu0 %v2275_v1 }
   0xd   :  { %v219_v10 = vpack.c.bf16 %v212_v9, %v212_v9  ;;  %v213_v25 = vld [vmem:[%s2805_s10] sm:$0xff]  ;;  %v305_v43 = vpack.c.bf16 %v1790_v39, %v1790_v39  ;;  %v1791_v11 = vld [vmem:[%s2805_s10 + $0x8] sm:$0xff] }
   0xf   :  { %1935 = vmatmul.mubr.msk.bf16.vlgmr.msra.gmra.mrb[0].mxu1 %vm41_vm1, %v219_v10  ;;  %1949 = vmatpush3.bf16.msra.mxu0 %v2454_v42 }
  0x10   :  { %1942 = vmatprep.mubr.msk.bf16.mxu1 %vm2276_vm0, %v2275_v1  ;;  %1939 = vmatpush3.bf16.msra.mxu1 %v2431_v38 }
  0x11   :  { %1940 = vmatprep.subr.bf16.mxu1 %v2275_v1  ;;  %1962 = vmatprep.subr.bf16.mxu0 %v2275_v1 }
  0x12   :  { %1927 = vmatmul.mubr.msk.bf16.gmra.mrb[4].mxu0 %vm41_vm1, %v2137_v37 }
  0x13   :  { %1950 = vmatprep.mubr.msk.bf16.mxu0 %vm2276_vm0, %v2275_v1 }
  0x14   :  { %1941 = vmatpush3.bf16.msra.mxu1 %v2446_v41 }
  0x15   :  { %1954 = vmatprep.subr.bf16.mxu1 %v2275_v1 }
  0x17   :  { %1943 = vmatmul.mubr.msk.bf16.vlgmr.msra.gmra.mrb[4].mxu1 %vm41_vm1, %v305_v43 }
  0x18   :  { %1955 = vmatpush3.bf16.msra.mxu1 %v2344_v2  ;;  %1958 = vmatprep.mubr.msk.bf16.mxu1 %vm2276_vm0, %v2275_v1 }
  0x19   :  { %1956 = vmatprep.subr.bf16.mxu1 %v2275_v1 }
  0x1c   :  { %1957 = vmatpush3.bf16.msra.mxu1 %v2353_v4 }
  0x1d   :  { %1970 = vmatprep.subr.bf16.mxu1 %v2275_v1 }
  0xdd   :  { %v2401_v13 = vpop.f32.mrb[0].mxu0 }
  0xde   :  { %v139_v15 = vpop.f32.mrb[1].mxu0 }
  0xdf   :  { %v2408_v16 = vpop.f32.mrb[2].mxu0  ;;  %v177_v18 = vadd.f32 %v2406_v14, %v139_v15 }
  0xe0   :  { %v2410_v17 = vpop.f32.mrb[3].mxu0 }
  0xe1   :  { %v178_v57 = vadd.f32 %v2406_v14, %v2410_v17 }
  0xe2   :  { %v269_v19 = vpop.f32.mrb[0].mxu1 }
  0xe3   :  { %v275_v20 = vadd.f32 %v269_v19, %v177_v18  ;;  %v1936_v21 = vpop.f32.mrb[1].mxu1 }
  0xe4   :  { %v272_v22 = vpop.f32.mrb[2].mxu1 }
  0xe5   :  { %2139 = vtanh.f32 %v275_v20  ;;  %v1937_v23 = vpop.f32.mrb[3].mxu1  ;;  %v1795_v26 = vmul.f32 -1.442695, %v275_v20  ;;  %v2472_v48 = vpop.f32.mrb[4].mxu0 }
  0xe6   :  { %v2474_v49 = vpop.f32.mrb[5].mxu0 }
  0xe7   :  { %2141 = vpow2.f32 %v1795_v26  ;;  %v2476_v50 = vpop.f32.mrb[6].mxu0 }
  0xe8   :  { %v2478_v51 = vpop.f32.mrb[7].mxu0 }
  0xea   :  { %v355_v52 = vpop.f32.mrb[4].mxu1 }
  0xeb   :  { %v1944_v53 = vpop.f32.mrb[5].mxu1 }
  0xec   :  { %v358_v54 = vpop.f32.mrb[6].mxu1 }
  0xed   :  { %v1945_v55 = vpop.f32.mrb[7].mxu1 }
  0xef   :  { %v2140_v24 = vpop.eup %2139 }
  0xf0   :  { %289 = vrot.lane.b32.xlu0 %v2140_v24, %s2277_s2 }
  0xf1   :  { %v2142_v27 = vpop.eup %2141 }
  0xf2   :  { %v279_v28 = vadd.f32 1.0, %v2142_v27 }
  0xf4   :  { %284 = vrot.lane.b32.xlu0 %v213_v25, %s2278_s3  ;;  %2143 = vrcp.f32 %v279_v28 }
  0xfe   :  { %v2144_v29 = vpop.eup %2143 }
 0x162   :  { %v290_v30 = vpop.permute.xlu0 %289 }
 0x163   :  { %v292_v31 = vmul.f32 %v2144_v29, %v290_v30 }
 0x165   :  { %294 = vrot.lane.b32.xlu1 %v292_v31, %s2278_s3 }
 0x166   :  { %v285_v32 = vpop.permute.xlu0 %284 }
 0x167   :  { %v287_v33 = vmul.f32 %v2144_v29, %v285_v32 }
 0x1d7   :  { %v295_v34 = vpop.permute.xlu1 %294 }
 0x1d8   :  { %v2419_v35 = vadd.f32 %v295_v34, %v287_v33 }
 0x1da   :  { %2145 = vtanh.f32 %v2419_v35 }
 0x1e4   :  { %v2146_v44 = vpop.eup %2145 }
 0x1e5   :  { %300 = vrot.lane.b32.xlu1 %v2146_v44, %s2277_s2 }
 0x257   :  { %v301_v45 = vpop.permute.xlu1 %300 }
 0x258   :  { %v303_v46 = vmul.f32 %v2144_v29, %v301_v45 }
 0x25a   :  { %v304_v47 = vpack.c.bf16 %v303_v46, %v303_v46 }
 0x25c   :  { %362 = vrot.lane.b32.xlu0 %v304_v47, %s2278_s3 }
 0x2ce   :  { %v363_v56 = vpop.permute.xlu0 %362 }
 0x2cf   :  { %1951 = vmatmul.mubr.msk.bf16.vlgmr.msra.gmra.mrb[8].mxu0 %vm41_vm1, %v363_v56  ;;  %1959 = vmatmul.mubr.msk.bf16.vlgmr.msra.gmra.mrb[8].mxu1 %vm41_vm1, %v363_v56 }
 0x2d0   :  { %1971 = vmatpush3.bf16.msra.mxu1 %v2439_v40  ;;  %1963 = vmatpush3.bf16.msra.mxu0 %v2431_v38 }
 0x2d1   :  { %1972 = vmatprep.subr.bf16.mxu1 %v2275_v1  ;;  %1964 = vmatprep.subr.bf16.mxu0 %v2275_v1 }
 0x2d2   :  { %1974 = vmatprep.mubr.msk.bf16.mxu1 %vm2276_vm0, %v2275_v1  ;;  %1966 = vmatprep.mubr.msk.bf16.mxu0 %vm2276_vm0, %v2275_v1 }
 0x2d4   :  { %1973 = vmatpush3.bf16.msra.mxu1 %v2454_v42  ;;  %1965 = vmatpush3.bf16.msra.mxu0 %v2446_v41 }
 0x2d5   :  { %1978 = vmatprep.subr.bf16.mxu0 %v2275_v1  ;;  %1986 = vmatprep.subr.bf16.mxu1 %v2275_v1 }
 0x3a2   :  { %v413_v59 = vpop.f32.mrb[8].mxu0  ;;  %v484_v60 = vpop.f32.mrb[8].mxu1 }
 0x3a3   :  { %v414_v61 = vadd.f32 %v413_v59, %v355_v52  ;;  %v490_v62 = vadd.f32 %v484_v60, %v178_v57  ;;  %v1952_v63 = vpop.f32.mrb[9].mxu0  ;;  %v1960_v0 = vpop.f32.mrb[9].mxu1 }
 0x3a4   :  { %v416_v3 = vpop.f32.mrb[10].mxu0  ;;  %v487_v5 = vpop.f32.mrb[10].mxu1  ;;  %v179_v63 = vadd.f32 %v2401_v13, %v2406_v14 }
 0x3a5   :  { %v419_v6 = vadd.f32 %v2499_v58, %v414_v61  ;;  %2147 = vtanh.f32 %v490_v62  ;;  %v1953_v7 = vpop.f32.mrb[11].mxu0  ;;  %v1961_v8 = vpop.f32.mrb[11].mxu1  ;;  %v1804_v12 = vmul.f32 -1.442695, %v490_v62 }
 0x3a7   :  { %2149 = vtanh.f32 %v419_v6  ;;  %v1802_v15 = vmul.f32 -1.442695, %v419_v6 }
 0x3a8   :  { %2151 = vpow2.f32 %v1804_v12 }
 0x3a9   :  { %2153 = vpow2.f32 %v1802_v15 }
 0x3af   :  { %v2148_v9 = vpop.eup %2147 }
 0x3b0   :  { %500 = vrot.lane.b32.xlu0 %v2148_v9, %s2277_s2 }
 0x3b1   :  { %v2150_v10 = vpop.eup %2149 }
 0x3b2   :  { %433 = vrot.lane.b32.xlu1 %v2150_v10, %s2277_s2  ;;  %v2152_v17 = vpop.eup %2151 }
 0x3b3   :  { %v2154_v18 = vpop.eup %2153  ;;  %v494_v19 = vadd.f32 1.0, %v2152_v17 }
 0x3b4   :  { %v423_v20 = vadd.f32 1.0, %v2154_v18 }
 0x3b5   :  { %2155 = vrcp.f32 %v494_v19 }
 0x3b6   :  { %428 = vrot.lane.b32.xlu1 %v1791_v11, %s2278_s3  ;;  %2157 = vrcp.f32 %v423_v20 }
 0x3bf   :  { %v2156_v21 = vpop.eup %2155 }
 0x3c0   :  { %v2158_v24 = vpop.eup %2157  ;;  %v498_v28 = vmul.f32 %v2156_v21, %v2419_v35 }
 0x422   :  { %v501_v22 = vpop.permute.xlu0 %500 }
 0x423   :  { %v503_v23 = vmul.f32 %v2156_v21, %v501_v22 }
 0x424   :  { %v434_v25 = vpop.permute.xlu1 %433 }
 0x425   :  { %v436_v26 = vmul.f32 %v2158_v24, %v434_v25  ;;  %505 = vrot.lane.b32.xlu1 %v503_v23, %s2278_s3 }
 0x427   :  { %438 = vrot.lane.b32.xlu0 %v436_v26, %s2278_s3 }
 0x428   :  { %v429_v27 = vpop.permute.xlu1 %428 }
 0x429   :  { %v431_v30 = vmul.f32 %v2158_v24, %v429_v27 }
 0x497   :  { %v506_v29 = vpop.permute.xlu1 %505 }
 0x498   :  { %v2511_v31 = vadd.f32 %v506_v29, %v498_v28 }
 0x499   :  { %v439_v32 = vpop.permute.xlu0 %438 }
 0x49a   :  { %2159 = vtanh.f32 %v2511_v31  ;;  %v2514_v33 = vadd.f32 %v439_v32, %v431_v30 }
 0x49c   :  { %2161 = vtanh.f32 %v2514_v33 }
 0x4a4   :  { %v2160_v34 = vpop.eup %2159 }
 0x4a5   :  { %511 = vrot.lane.b32.xlu1 %v2160_v34, %s2277_s2 }
 0x4a6   :  { %v2162_v36 = vpop.eup %2161 }
 0x4a7   :  { %444 = vrot.lane.b32.xlu0 %v2162_v36, %s2277_s2 }
 0x517   :  { %v512_v37 = vpop.permute.xlu1 %511 }
 0x518   :  { %v514_v39 = vmul.f32 %v2156_v21, %v512_v37 }
 0x519   :  { %v445_v35 = vpop.permute.xlu0 %444 }
 0x51a   :  { %v515_v43 = vpack.c.bf16 %v514_v39, %v514_v39  ;;  %v447_v44 = vmul.f32 %v2158_v24, %v445_v35 }
 0x51c   :  { %v516_v45 = vpack.c.bf16 %v447_v44, %v447_v44  ;;  %564 = vrot.lane.b32.xlu1 %v515_v43, %s2278_s3 }
 0x51e   :  { %518 = vrot.lane.b32.xlu0 %v516_v45, %s2278_s3 }
 0x58e   :  { %v565_v46 = vpop.permute.xlu1 %564 }
 0x58f   :  { %1975 = vmatmul.mubr.msk.bf16.vlgmr.msra.gmra.mrb[12].mxu1 %vm41_vm1, %v565_v46 }
 0x590   :  { %v519_v47 = vpop.permute.xlu0 %518  ;;  %1987 = vmatpush3.bf16.msra.mxu1 %v2431_v38  ;;  %1990 = vmatprep.mubr.msk.bf16.mxu1 %vm2276_vm0, %v2275_v1 }
 0x591   :  { %1967 = vmatmul.mubr.msk.bf16.vlgmr.msra.gmra.mrb[12].mxu0 %vm41_vm1, %v519_v47  ;;  %1988 = vmatprep.subr.bf16.mxu1 %v2275_v1 }
 0x592   :  { %1979 = vmatpush3.bf16.msra.mxu0 %v2344_v2  ;;  %1982 = vmatprep.mubr.msk.bf16.mxu0 %vm2276_vm0, %v2275_v1 }
 0x593   :  { %1980 = vmatprep.subr.bf16.mxu0 %v2275_v1 }
 0x594   :  { %1989 = vmatpush3.bf16.msra.mxu1 %v2446_v41 }
 0x595   :  { %2002 = vmatprep.subr.bf16.mxu1 %v2275_v1 }
 0x596   :  { %1981 = vmatpush3.bf16.msra.mxu0 %v2353_v4 }
 0x597   :  { %1994 = vmatprep.subr.bf16.mxu0 %v2275_v1 }
 0x599   :  { %1983 = vmatmul.mubr.msk.bf16.vlgmr.msra.gmra.mrb[16].mxu0 %vm41_vm1, %v565_v46 }
 0x59a   :  { %1995 = vmatpush3.bf16.msra.mxu0 %v2439_v40  ;;  %1998 = vmatprep.mubr.msk.bf16.mxu0 %vm2276_vm0, %v2275_v1 }
 0x59b   :  { %1996 = vmatprep.subr.bf16.mxu0 %v2275_v1 }
 0x59e   :  { %1997 = vmatpush3.bf16.msra.mxu0 %v2454_v42 }
 0x59f   :  { %2010 = vmatprep.subr.bf16.mxu0 %v2275_v1 }
 0x662   :  { %v603_v52 = vpop.f32.mrb[12].mxu1 }
 0x663   :  { %v1976_v53 = vpop.f32.mrb[13].mxu1 }
 0x664   :  { %v557_v54 = vpop.f32.mrb[12].mxu0  ;;  %v606_v55 = vpop.f32.mrb[14].mxu1  ;;  %v180_v53 = vadd.f32 %v2408_v16, %v2406_v14 }
 0x665   :  { %v604_v56 = vadd.f32 %v603_v52, %v557_v54  ;;  %v1968_v57 = vpop.f32.mrb[13].mxu0  ;;  %v1977_v59 = vpop.f32.mrb[15].mxu1 }
 0x666   :  { %v560_v60 = vpop.f32.mrb[14].mxu0 }
 0x667   :  { %v609_v61 = vadd.f32 %v2499_v58, %v604_v56  ;;  %v1969_v62 = vpop.f32.mrb[15].mxu0 }
 0x669   :  { %2163 = vtanh.f32 %v609_v61  ;;  %v1807_v10 = vmul.f32 -1.442695, %v609_v61 }
 0x66c   :  { %v670_v0 = vpop.f32.mrb[16].mxu0 }
 0x66d   :  { %v676_v3 = vadd.f32 %v670_v0, %v179_v63  ;;  %v1984_v5 = vpop.f32.mrb[17].mxu0 }
 0x66e   :  { %v673_v6 = vpop.f32.mrb[18].mxu0 }
 0x66f   :  { %2165 = vtanh.f32 %v676_v3  ;;  %v1985_v7 = vpop.f32.mrb[19].mxu0  ;;  %v1809_v11 = vmul.f32 -1.442695, %v676_v3 }
 0x670   :  { %2167 = vpow2.f32 %v1807_v10 }
 0x671   :  { %2169 = vpow2.f32 %v1809_v11 }
 0x673   :  { %v2164_v8 = vpop.eup %2163 }
 0x674   :  { %619 = vrot.lane.b32.xlu0 %v2164_v8, %s2277_s2 }
 0x679   :  { %v2166_v9 = vpop.eup %2165 }
 0x67a   :  { %686 = vrot.lane.b32.xlu1 %v2166_v9, %s2277_s2  ;;  %v2168_v12 = vpop.eup %2167 }
 0x67b   :  { %v613_v15 = vadd.f32 1.0, %v2168_v12  ;;  %v2170_v17 = vpop.eup %2169 }
 0x67c   :  { %v680_v13 = vadd.f32 1.0, %v2170_v17 }
 0x67d   :  { %2171 = vrcp.f32 %v613_v15 }
 0x67e   :  { %2173 = vrcp.f32 %v680_v13 }
 0x687   :  { %v2172_v18 = vpop.eup %2171 }
 0x688   :  { %v2174_v21 = vpop.eup %2173  ;;  %v617_v24 = vmul.f32 %v2172_v18, %v2514_v33 }
 0x689   :  { %v684_v27 = vmul.f32 %v2174_v21, %v2511_v31 }
 0x6e6   :  { %v620_v19 = vpop.permute.xlu0 %619 }
 0x6e7   :  { %v622_v20 = vmul.f32 %v2172_v18, %v620_v19 }
 0x6e9   :  { %624 = vrot.lane.b32.xlu0 %v622_v20, %s2278_s3 }
 0x6ec   :  { %v687_v22 = vpop.permute.xlu1 %686 }
 0x6ed   :  { %v689_v23 = vmul.f32 %v2174_v21, %v687_v22 }
 0x6ef   :  { %691 = vrot.lane.b32.xlu1 %v689_v23, %s2278_s3 }
 0x75b   :  { %v625_v25 = vpop.permute.xlu0 %624 }
 0x75c   :  { %v2550_v26 = vadd.f32 %v625_v25, %v617_v24 }
 0x75e   :  { %2175 = vtanh.f32 %v2550_v26 }
 0x761   :  { %v692_v28 = vpop.permute.xlu1 %691 }
 0x762   :  { %v2554_v29 = vadd.f32 %v692_v28, %v684_v27 }
 0x764   :  { %2177 = vtanh.f32 %v2554_v29 }
 0x768   :  { %v2176_v30 = vpop.eup %2175 }
 0x769   :  { %630 = vrot.lane.b32.xlu0 %v2176_v30, %s2277_s2 }
 0x76e   :  { %v2178_v32 = vpop.eup %2177 }
 0x76f   :  { %697 = vrot.lane.b32.xlu1 %v2178_v32, %s2277_s2 }
 0x7db   :  { %v631_v34 = vpop.permute.xlu0 %630 }
 0x7dc   :  { %v633_v33 = vmul.f32 %v2172_v18, %v631_v34 }
 0x7de   :  { %v702_v36 = vpack.c.bf16 %v633_v33, %v633_v33 }
 0x7e0   :  { %704 = vrot.lane.b32.xlu0 %v702_v36, %s2278_s3 }
 0x7e1   :  { %v698_v37 = vpop.permute.xlu1 %697 }
 0x7e2   :  { %v700_v39 = vmul.f32 %v2174_v21, %v698_v37 }
 0x7e4   :  { %v701_v35 = vpack.c.bf16 %v700_v39, %v700_v39 }
 0x7e6   :  { %750 = vrot.lane.b32.xlu1 %v701_v35, %s2278_s3 }
 0x852   :  { %v705_v31 = vpop.permute.xlu0 %704 }
 0x853   :  { %1991 = vmatmul.mubr.msk.bf16.vlgmr.msra.gmra.mrb[16].mxu1 %vm41_vm1, %v705_v31 }
 0x854   :  { %2003 = vmatpush3.bf16.msra.mxu1 %v2344_v2  ;;  %2006 = vmatprep.mubr.msk.bf16.mxu1 %vm2276_vm0, %v2275_v1 }
 0x855   :  { %2004 = vmatprep.subr.bf16.mxu1 %v2275_v1 }
 0x858   :  { %2005 = vmatpush3.bf16.msra.mxu1 %v2353_v4  ;;  %v751_v43 = vpop.permute.xlu1 %750 }
 0x859   :  { %1999 = vmatmul.mubr.msk.bf16.vlgmr.msra.gmra.mrb[20].mxu0 %vm41_vm1, %v751_v43  ;;  %2018 = vmatprep.subr.bf16.mxu1 %v2275_v1 }
 0x85a   :  { %2011 = vmatpush3.bf16.msra.mxu0 %v2431_v38  ;;  %2014 = vmatprep.mubr.msk.bf16.mxu0 %vm2276_vm0, %v2275_v1 }
 0x85b   :  { %2007 = vmatmul.mubr.msk.bf16.vlgmr.msra.gmra.mrb[20].mxu1 %vm41_vm1, %v751_v43  ;;  %2012 = vmatprep.subr.bf16.mxu0 %v2275_v1 }
 0x85c   :  { %2019 = vmatpush3.bf16.msra.mxu1 %v2439_v40  ;;  %2022 = vmatprep.mubr.msk.bf16.mxu1 %vm2276_vm0, %v2275_v1 }
 0x85d   :  { %2020 = vmatprep.subr.bf16.mxu1 %v2275_v1 }
 0x85e   :  { %2013 = vmatpush3.bf16.msra.mxu0 %v2446_v41 }
 0x85f   :  { %2026 = vmatprep.subr.bf16.mxu0 %v2275_v1 }
 0x860   :  { %2021 = vmatpush3.bf16.msra.mxu1 %v2454_v42 }
 0x861   :  { %2034 = vmatprep.subr.bf16.mxu1 %v2275_v1 }
 0x926   :  { %v743_v44 = vpop.f32.mrb[16].mxu1 }
 0x927   :  { %v1992_v45 = vpop.f32.mrb[17].mxu1 }
 0x928   :  { %v746_v46 = vpop.f32.mrb[18].mxu1 }
 0x929   :  { %v1993_v47 = vpop.f32.mrb[19].mxu1 }
 0x92c   :  { %v789_v52 = vpop.f32.mrb[20].mxu0 }
 0x92d   :  { %v790_v54 = vadd.f32 %v789_v52, %v743_v44  ;;  %v2000_v55 = vpop.f32.mrb[21].mxu0 }
 0x92e   :  { %v792_v56 = vpop.f32.mrb[22].mxu0  ;;  %v856_v57 = vpop.f32.mrb[20].mxu1 }
 0x92f   :  { %v795_v59 = vadd.f32 %v2499_v58, %v790_v54  ;;  %v862_v60 = vadd.f32 %v856_v57, %v180_v53  ;;  %v2001_v61 = vpop.f32.mrb[23].mxu0  ;;  %v2008_v62 = vpop.f32.mrb[21].mxu1  ;;  %v181_v53 = vadd.f32 %v2406_v14, %v2474_v49 }
 0x930   :  { %v859_v63 = vpop.f32.mrb[22].mxu1 }
 0x931   :  { %2179 = vtanh.f32 %v795_v59  ;;  %v2009_v0 = vpop.f32.mrb[23].mxu1  ;;  %v1812_v16 = vmul.f32 -1.442695, %v795_v59  ;;  %v1814_v6 = vmul.f32 -1.442695, %v862_v60 }
 0x932   :  { %2181 = vtanh.f32 %v862_v60 }
 0x933   :  { %2183 = vpow2.f32 %v1812_v16 }
 0x934   :  { %2185 = vpow2.f32 %v1814_v6 }
 0x93b   :  { %v2180_v3 = vpop.eup %2179 }
 0x93c   :  { %v2182_v5 = vpop.eup %2181  ;;  %805 = vrot.lane.b32.xlu0 %v2180_v3, %s2277_s2 }
 0x93d   :  { %872 = vrot.lane.b32.xlu1 %v2182_v5, %s2277_s2  ;;  %v2184_v7 = vpop.eup %2183 }
 0x93e   :  { %v2186_v8 = vpop.eup %2185  ;;  %v799_v9 = vadd.f32 1.0, %v2184_v7 }
 0x93f   :  { %v866_v10 = vadd.f32 1.0, %v2186_v8 }
 0x940   :  { %2187 = vrcp.f32 %v799_v9 }
 0x941   :  { %2189 = vrcp.f32 %v866_v10 }
 0x94a   :  { %v2188_v11 = vpop.eup %2187 }
 0x94b   :  { %v2190_v15 = vpop.eup %2189  ;;  %v803_v19 = vmul.f32 %v2188_v11, %v2550_v26 }
 0x94c   :  { %v870_v20 = vmul.f32 %v2190_v15, %v2554_v29 }
 0x9ae   :  { %v806_v12 = vpop.permute.xlu0 %805 }
 0x9af   :  { %v873_v17 = vpop.permute.xlu1 %872  ;;  %v808_v13 = vmul.f32 %v2188_v11, %v806_v12 }
 0x9b0   :  { %v875_v18 = vmul.f32 %v2190_v15, %v873_v17 }
 0x9b1   :  { %810 = vrot.lane.b32.xlu0 %v808_v13, %s2278_s3 }
 0x9b2   :  { %877 = vrot.lane.b32.xlu1 %v875_v18, %s2278_s3 }
 0xa23   :  { %v811_v21 = vpop.permute.xlu0 %810 }
 0xa24   :  { %v878_v22 = vpop.permute.xlu1 %877  ;;  %v2591_v23 = vadd.f32 %v811_v21, %v803_v19 }
 0xa25   :  { %v2593_v24 = vadd.f32 %v878_v22, %v870_v20 }
 0xa26   :  { %2191 = vtanh.f32 %v2591_v23 }
 0xa27   :  { %2193 = vtanh.f32 %v2593_v24 }
 0xa30   :  { %v2192_v25 = vpop.eup %2191 }
 0xa31   :  { %v2194_v27 = vpop.eup %2193  ;;  %816 = vrot.lane.b32.xlu0 %v2192_v25, %s2277_s2 }
 0xa32   :  { %883 = vrot.lane.b32.xlu1 %v2194_v27, %s2277_s2 }
 0xaa3   :  { %v817_v28 = vpop.permute.xlu0 %816 }
 0xaa4   :  { %v884_v26 = vpop.permute.xlu1 %883  ;;  %v819_v30 = vmul.f32 %v2188_v11, %v817_v28 }
 0xaa5   :  { %v886_v29 = vmul.f32 %v2190_v15, %v884_v26 }
 0xaa6   :  { %v888_v32 = vpack.c.bf16 %v819_v30, %v819_v30 }
 0xaa7   :  { %v887_v34 = vpack.c.bf16 %v886_v29, %v886_v29 }
 0xaa8   :  { %890 = vrot.lane.b32.xlu0 %v888_v32, %s2278_s3 }
 0xaa9   :  { %936 = vrot.lane.b32.xlu1 %v887_v34, %s2278_s3 }
 0xb1a   :  { %v891_v33 = vpop.permute.xlu0 %890 }
 0xb1b   :  { %v937_v36 = vpop.permute.xlu1 %936  ;;  %2015 = vmatmul.mubr.msk.bf16.vlgmr.msra.gmra.mrb[24].mxu0 %vm41_vm1, %v891_v33 }
 0xb1c   :  { %2023 = vmatmul.mubr.msk.bf16.vlgmr.msra.gmra.mrb[24].mxu1 %vm41_vm1, %v937_v36  ;;  %2027 = vmatpush3.bf16.msra.mxu0 %v2344_v2 }
 0xb1d   :  { %2028 = vmatprep.subr.bf16.mxu0 %v2275_v1  ;;  %2030 = vmatprep.mubr.msk.bf16.mxu0 %vm2276_vm0, %v2275_v1 }
 0xb1e   :  { %2035 = vmatpush3.bf16.msra.mxu1 %v2431_v38  ;;  %2038 = vmatprep.mubr.msk.bf16.mxu1 %vm2276_vm0, %v2275_v1 }
 0xb1f   :  { %2036 = vmatprep.subr.bf16.mxu1 %v2275_v1 }
 0xb20   :  { %2029 = vmatpush3.bf16.msra.mxu0 %v2353_v4 }
 0xb21   :  { %2042 = vmatprep.subr.bf16.mxu0 %v2275_v1 }
 0xb22   :  { %2037 = vmatpush3.bf16.msra.mxu1 %v2446_v41 }
 0xb23   :  { %2031 = vmatmul.mubr.msk.bf16.vlgmr.msra.gmra.mrb[28].mxu0 %vm41_vm1, %v937_v36  ;;  %2050 = vmatprep.subr.bf16.mxu1 %v2275_v1  ;;  %v182_v36 = vadd.f32 %v2406_v14, %v2478_v51 }
 0xb24   :  { %2043 = vmatpush3.bf16.msra.mxu0 %v2439_v40  ;;  %2046 = vmatprep.mubr.msk.bf16.mxu0 %vm2276_vm0, %v2275_v1 }
 0xb25   :  { %2044 = vmatprep.subr.bf16.mxu0 %v2275_v1 }
 0xb28   :  { %2045 = vmatpush3.bf16.msra.mxu0 %v2454_v42 }
 0xb29   :  { %2058 = vmatprep.subr.bf16.mxu0 %v2275_v1 }
 0xbee   :  { %v929_v37 = vpop.f32.mrb[24].mxu0 }
 0xbef   :  { %v975_v39 = vpop.f32.mrb[24].mxu1  ;;  %v2016_v35 = vpop.f32.mrb[25].mxu0 }
 0xbf0   :  { %v976_v31 = vadd.f32 %v975_v39, %v929_v37  ;;  %v2024_v43 = vpop.f32.mrb[25].mxu1  ;;  %v932_v44 = vpop.f32.mrb[26].mxu0 }
 0xbf1   :  { %v978_v45 = vpop.f32.mrb[26].mxu1  ;;  %v2017_v46 = vpop.f32.mrb[27].mxu0 }
 0xbf2   :  { %v981_v47 = vadd.f32 %v2499_v58, %v976_v31  ;;  %v2025_v52 = vpop.f32.mrb[27].mxu1 }
 0xbf4   :  { %2195 = vtanh.f32 %v981_v47  ;;  %v1817_v62 = vmul.f32 -1.442695, %v981_v47 }
 0xbf6   :  { %v1042_v54 = vpop.f32.mrb[28].mxu0 }
 0xbf7   :  { %v1048_v55 = vadd.f32 %v1042_v54, %v181_v53  ;;  %v2032_v56 = vpop.f32.mrb[29].mxu0 }
 0xbf8   :  { %v1045_v57 = vpop.f32.mrb[30].mxu0 }
 0xbf9   :  { %2197 = vtanh.f32 %v1048_v55  ;;  %v2033_v59 = vpop.f32.mrb[31].mxu0  ;;  %v1819_v63 = vmul.f32 -1.442695, %v1048_v55 }
 0xbfa   :  { %2199 = vpow2.f32 %v1817_v62 }
 0xbfb   :  { %2201 = vpow2.f32 %v1819_v63 }
 0xbfe   :  { %v2196_v60 = vpop.eup %2195 }
 0xbff   :  { %991 = vrot.lane.b32.xlu0 %v2196_v60, %s2277_s2 }
 0xc03   :  { %v2198_v61 = vpop.eup %2197 }
 0xc04   :  { %1058 = vrot.lane.b32.xlu1 %v2198_v61, %s2277_s2  ;;  %v2200_v0 = vpop.eup %2199 }
 0xc05   :  { %v985_v3 = vadd.f32 1.0, %v2200_v0  ;;  %v2202_v5 = vpop.eup %2201 }
 0xc06   :  { %v1052_v49 = vadd.f32 1.0, %v2202_v5 }
 0xc07   :  { %2203 = vrcp.f32 %v985_v3 }
 0xc08   :  { %2205 = vrcp.f32 %v1052_v49 }
 0xc11   :  { %v2204_v16 = vpop.eup %2203 }
 0xc12   :  { %v2206_v8 = vpop.eup %2205  ;;  %v989_v11 = vmul.f32 %v2204_v16, %v2591_v23 }
 0xc13   :  { %v1056_v17 = vmul.f32 %v2206_v8, %v2593_v24 }
 0xc71   :  { %v992_v6 = vpop.permute.xlu0 %991 }
 0xc72   :  { %v994_v7 = vmul.f32 %v2204_v16, %v992_v6 }
 0xc74   :  { %996 = vrot.lane.b32.xlu0 %v994_v7, %s2278_s3 }
 0xc76   :  { %v1059_v9 = vpop.permute.xlu1 %1058 }
 0xc77   :  { %v1061_v10 = vmul.f32 %v2206_v8, %v1059_v9 }
 0xc79   :  { %1063 = vrot.lane.b32.xlu1 %v1061_v10, %s2278_s3 }
 0xce6   :  { %v997_v12 = vpop.permute.xlu0 %996 }
 0xce7   :  { %v2630_v15 = vadd.f32 %v997_v12, %v989_v11 }
 0xce9   :  { %2207 = vtanh.f32 %v2630_v15 }
 0xceb   :  { %v1064_v13 = vpop.permute.xlu1 %1063 }
 0xcec   :  { %v2634_v18 = vadd.f32 %v1064_v13, %v1056_v17 }
 0xcee   :  { %2209 = vtanh.f32 %v2634_v18 }
 0xcf3   :  { %v2208_v19 = vpop.eup %2207 }
 0xcf4   :  { %1002 = vrot.lane.b32.xlu0 %v2208_v19, %s2277_s2 }
 0xcf8   :  { %v2210_v20 = vpop.eup %2209 }
 0xcf9   :  { %1069 = vrot.lane.b32.xlu1 %v2210_v20, %s2277_s2  ;;  %v2686_v20 = vld [vmem:[%s2800_s4] sm:$0xff]  }
 0xd66   :  { %v1003_v21 = vpop.permute.xlu0 %1002 }
 0xd67   :  { %v1005_v22 = vmul.f32 %v2204_v16, %v1003_v21  ;;  %v2699_v21 = vld [vmem:[%s2800_s4 + $0x8] sm:$0xff]  }
 0xd69   :  { %v1074_v23 = vpack.c.bf16 %v1005_v22, %v1005_v22 }
 0xd6b   :  { %1076 = vrot.lane.b32.xlu0 %v1074_v23, %s2278_s3  ;;  %v1070_v25 = vpop.permute.xlu1 %1069 }
 0xd6c   :  { %v1072_v27 = vmul.f32 %v2206_v8, %v1070_v25 }
 0xd6e   :  { %v1073_v28 = vpack.c.bf16 %v1072_v27, %v1072_v27 }
 0xd70   :  { %1122 = vrot.lane.b32.xlu1 %v1073_v28, %s2278_s3 }
 0xddd   :  { %v1077_v24 = vpop.permute.xlu0 %1076 }
 0xdde   :  { %2039 = vmatmul.mubr.msk.bf16.vlgmr.msra.gmra.mrb[28].mxu1 %vm41_vm1, %v1077_v24 }
 0xddf   :  { %2051 = vmatpush3.bf16.msra.mxu1 %v2344_v2  ;;  %2054 = vmatprep.mubr.msk.bf16.mxu1 %vm2276_vm0, %v2275_v1 }
 0xde0   :  { %2052 = vmatprep.subr.bf16.mxu1 %v2275_v1 }
 0xde2   :  { %v1123_v26 = vpop.permute.xlu1 %1122 }
 0xde3   :  { %2053 = vmatpush3.bf16.msra.mxu1 %v2353_v4  ;;  %2047 = vmatmul.mubr.msk.bf16.vlgmr.msra.gmra.mrb[32].mxu0 %vm41_vm1, %v1123_v26 }
 0xde4   :  { %2066 = vmatprep.subr.bf16.mxu1 %v2275_v1  ;;  %2059 = vmatpush3.bf16.msra.mxu0 %v2431_v38 }
 0xde5   :  { %2060 = vmatprep.subr.bf16.mxu0 %v2275_v1  ;;  %2062 = vmatprep.mubr.msk.bf16.mxu0 %vm2276_vm0, %v2275_v1 }
 0xde6   :  { %2055 = vmatmul.mubr.msk.bf16.vlgmr.msra.gmra.mrb[32].mxu1 %vm41_vm1, %v1123_v26 }
 0xde7   :  { %2067 = vmatpush3.bf16.msra.mxu1 %v2439_v40  ;;  %2070 = vmatprep.mubr.msk.bf16.mxu1 %vm2276_vm0, %v2275_v1 }
 0xde8   :  { %2068 = vmatprep.subr.bf16.mxu1 %v2275_v1  ;;  %2061 = vmatpush3.bf16.msra.mxu0 %v2446_v41 }
 0xde9   :  { %2074 = vmatprep.subr.bf16.mxu0 %v2275_v1 }
 0xdeb   :  { %2069 = vmatpush3.bf16.msra.mxu1 %v2454_v42 }
 0xdec   :  { %2082 = vmatprep.subr.bf16.mxu1 %v2275_v1 }
 0xeb1   :  { %v1115_v2 = vpop.f32.mrb[28].mxu1 }
 0xeb2   :  { %v2040_v4 = vpop.f32.mrb[29].mxu1 }
 0xeb3   :  { %v1118_v30 = vpop.f32.mrb[30].mxu1 }
 0xeb4   :  { %v2041_v29 = vpop.f32.mrb[31].mxu1 }
 0xeb6   :  { %v1161_v32 = vpop.f32.mrb[32].mxu0 }
 0xeb7   :  { %v1162_v34 = vadd.f32 %v1161_v32, %v1115_v2  ;;  %v2048_v33 = vpop.f32.mrb[33].mxu0  ;;  %v183_v2 = vadd.f32 %v2472_v48, %v2406_v14 }
 0xeb8   :  { %v1164_v37 = vpop.f32.mrb[34].mxu0 }
 0xeb9   :  { %v1167_v39 = vadd.f32 %v2499_v58, %v1162_v34  ;;  %v1228_v35 = vpop.f32.mrb[32].mxu1  ;;  %v2049_v31 = vpop.f32.mrb[35].mxu0 }
 0xeba   :  { %v1234_v43 = vadd.f32 %v1228_v35, %v182_v36  ;;  %v2056_v44 = vpop.f32.mrb[33].mxu1 }
 0xebb   :  { %2211 = vtanh.f32 %v1167_v39  ;;  %v1231_v45 = vpop.f32.mrb[34].mxu1  ;;  %v1822_v53 = vmul.f32 -1.442695, %v1167_v39 }
 0xebc   :  { %2213 = vtanh.f32 %v1234_v43  ;;  %v2057_v46 = vpop.f32.mrb[35].mxu1  ;;  %v1824_v54 = vmul.f32 -1.442695, %v1234_v43 }
 0xebd   :  { %2215 = vpow2.f32 %v1822_v53 }
 0xebe   :  { %2217 = vpow2.f32 %v1824_v54 }
 0xec5   :  { %v2212_v47 = vpop.eup %2211 }
 0xec6   :  { %v2214_v52 = vpop.eup %2213  ;;  %1177 = vrot.lane.b32.xlu0 %v2212_v47, %s2277_s2 }
 0xec7   :  { %1244 = vrot.lane.b32.xlu1 %v2214_v52, %s2277_s2  ;;  %v2216_v51 = vpop.eup %2215 }
 0xec8   :  { %v2218_v55 = vpop.eup %2217  ;;  %v1171_v56 = vadd.f32 1.0, %v2216_v51 }
 0xec9   :  { %v1238_v57 = vadd.f32 1.0, %v2218_v55 }
 0xeca   :  { %2219 = vrcp.f32 %v1171_v56 }
 0xecb   :  { %2221 = vrcp.f32 %v1238_v57 }
 0xed4   :  { %v2220_v59 = vpop.eup %2219 }
 0xed5   :  { %v2222_v61 = vpop.eup %2221  ;;  %v1175_v3 = vmul.f32 %v2220_v59, %v2630_v15 }
 0xed6   :  { %v1242_v49 = vmul.f32 %v2222_v61, %v2634_v18 }
 0xf38   :  { %v1178_v60 = vpop.permute.xlu0 %1177 }
 0xf39   :  { %v1180_v62 = vmul.f32 %v2220_v59, %v1178_v60  ;;  %v1245_v63 = vpop.permute.xlu1 %1244 }
 0xf3a   :  { %v1247_v0 = vmul.f32 %v2222_v61, %v1245_v63 }
 0xf3b   :  { %1182 = vrot.lane.b32.xlu0 %v1180_v62, %s2278_s3 }
 0xf3c   :  { %1249 = vrot.lane.b32.xlu1 %v1247_v0, %s2278_s3 }
 0xfad   :  { %v1183_v5 = vpop.permute.xlu0 %1182 }
 0xfae   :  { %v2671_v16 = vadd.f32 %v1183_v5, %v1175_v3  ;;  %v1250_v6 = vpop.permute.xlu1 %1249 }
 0xfaf   :  { %v2673_v7 = vadd.f32 %v1250_v6, %v1242_v49  ;;  %v2270_v6 = vld [vmem:[%s2808_s6] sm:$0xff]  }
 0xfb0   :  { %2223 = vtanh.f32 %v2671_v16 }
 0xfb1   :  { %2225 = vtanh.f32 %v2673_v7 }
 0xfba   :  { %v2224_v8 = vpop.eup %2223 }
 0xfbb   :  { %v2226_v9 = vpop.eup %2225  ;;  %1188 = vrot.lane.b32.xlu0 %v2224_v8, %s2277_s2  ;;  %v2272_v8 = vld [vmem:[%s2808_s6 + $0x8] sm:$0xff]  }
 0xfbc   :  { %1255 = vrot.lane.b32.xlu1 %v2226_v9, %s2277_s2 }
0x102d   :  { %v1189_v10 = vpop.permute.xlu0 %1188 }
0x102e   :  { %v1191_v11 = vmul.f32 %v2220_v59, %v1189_v10  ;;  %v1256_v12 = vpop.permute.xlu1 %1255 }
0x102f   :  { %v1258_v15 = vmul.f32 %v2222_v61, %v1256_v12 }
0x1030   :  { %v1260_v17 = vpack.c.bf16 %v1191_v11, %v1191_v11 }
0x1031   :  { %v1259_v13 = vpack.c.bf16 %v1258_v15, %v1258_v15 }
0x1032   :  { %1262 = vrot.lane.b32.xlu0 %v1260_v17, %s2278_s3 }
0x1033   :  { %1308 = vrot.lane.b32.xlu1 %v1259_v13, %s2278_s3 }
0x10a4   :  { %v1263_v18 = vpop.permute.xlu0 %1262 }
0x10a5   :  { %v1309_v19 = vpop.permute.xlu1 %1308  ;;  %2063 = vmatmul.mubr.msk.bf16.vlgmr.msra.gmra.mrb[36].mxu0 %vm41_vm1, %v1263_v18 }
0x10a6   :  { %2071 = vmatmul.mubr.msk.bf16.vlgmr.msra.gmra.mrb[36].mxu1 %vm41_vm1, %v1309_v19  ;;  %2075 = vmatpush3.bf16.msra.mxu0 %v2686_v20 }
0x10a7   :  { %2076 = vmatprep.subr.bf16.mxu0 %v2275_v1  ;;  %2078 = vmatprep.mubr.msk.bf16.mxu0 %vm2276_vm0, %v2275_v1 }
0x10a8   :  { %2083 = vmatpush3.bf16.msra.mxu1 %v2431_v38  ;;  %2086 = vmatprep.mubr.msk.bf16.mxu1 %vm2276_vm0, %v2275_v1 }
0x10a9   :  { %2084 = vmatprep.subr.bf16.mxu1 %v2275_v1 }
0x10aa   :  { %2077 = vmatpush3.bf16.msra.mxu0 %v2699_v21 }
0x10ab   :  { %2090 = vmatprep.subr.bf16.mxu0 %v2275_v1 }
0x10ac   :  { %2085 = vmatpush3.bf16.msra.mxu1 %v2446_v41 }
0x10ad   :  { %2079 = vmatmul.mubr.msk.bf16.vlgmr.msra.gmra.mrb[40].mxu0 %vm41_vm1, %v1309_v19  ;;  %2098 = vmatprep.subr.bf16.mxu1 %v2275_v1 }
0x10ae   :  { %2091 = vmatpush3.bf16.msra.mxu0 %v2439_v40  ;;  %2094 = vmatprep.mubr.msk.bf16.mxu0 %vm2276_vm0, %v2275_v1 }
0x10af   :  { %2092 = vmatprep.subr.bf16.mxu0 %v2275_v1 }
0x10b2   :  { %2093 = vmatpush3.bf16.msra.mxu0 %v2454_v42 }
0x10b3   :  { %2106 = vmatprep.subr.bf16.mxu0 %v2275_v1 }
0x1178   :  { %v1301_v38 = vpop.f32.mrb[36].mxu0 }
0x1179   :  { %v1347_v22 = vpop.f32.mrb[36].mxu1  ;;  %v2064_v23 = vpop.f32.mrb[37].mxu0 }
0x117a   :  { %v1348_v25 = vadd.f32 %v1347_v22, %v1301_v38  ;;  %v2072_v41 = vpop.f32.mrb[37].mxu1  ;;  %v1304_v27 = vpop.f32.mrb[38].mxu0 }
0x117b   :  { %v1350_v28 = vpop.f32.mrb[38].mxu1  ;;  %v2065_v24 = vpop.f32.mrb[39].mxu0 }
0x117c   :  { %v1353_v26 = vadd.f32 %v2499_v58, %v1348_v25  ;;  %v2073_v40 = vpop.f32.mrb[39].mxu1 }
0x117e   :  { %2227 = vtanh.f32 %v1353_v26  ;;  %v1827_v36 = vmul.f32 -1.442695, %v1353_v26 }
0x1180   :  { %v1414_v4 = vpop.f32.mrb[40].mxu0 }
0x1181   :  { %v1420_v30 = vadd.f32 %v1414_v4, %v183_v2  ;;  %v2080_v42 = vpop.f32.mrb[41].mxu0 }
0x1182   :  { %v1417_v29 = vpop.f32.mrb[42].mxu0 }
0x1183   :  { %2229 = vtanh.f32 %v1420_v30  ;;  %v2081_v32 = vpop.f32.mrb[43].mxu0  ;;  %v1829_v37 = vmul.f32 -1.442695, %v1420_v30 }
0x1184   :  { %2231 = vpow2.f32 %v1827_v36 }
0x1185   :  { %2233 = vpow2.f32 %v1829_v37 }
0x1188   :  { %v2228_v34 = vpop.eup %2227 }
0x1189   :  { %1363 = vrot.lane.b32.xlu0 %v2228_v34, %s2277_s2 }
0x118d   :  { %v2230_v33 = vpop.eup %2229 }
0x118e   :  { %1430 = vrot.lane.b32.xlu1 %v2230_v33, %s2277_s2  ;;  %v2232_v39 = vpop.eup %2231 }
0x118f   :  { %v1357_v35 = vadd.f32 1.0, %v2232_v39  ;;  %v2234_v31 = vpop.eup %2233 }
0x1190   :  { %v1424_v14 = vadd.f32 1.0, %v2234_v31 }
0x1191   :  { %2235 = vrcp.f32 %v1357_v35 }
0x1192   :  { %2237 = vrcp.f32 %v1424_v14 }
0x119b   :  { %v2236_v48 = vpop.eup %2235 }
0x119c   :  { %v2238_v45 = vpop.eup %2237  ;;  %v1361_v52 = vmul.f32 %v2236_v48, %v2671_v16  ;;  %v2269_v16 = vld [vmem:[%s2807_s7] sm:$0xff]  }
0x119d   :  { %v1428_v51 = vmul.f32 %v2238_v45, %v2673_v7  ;;  %v2271_v7 = vld [vmem:[%s2807_s7 + $0x8] sm:$0xff]  }
0x11fb   :  { %v1364_v43 = vpop.permute.xlu0 %1363 }
0x11fc   :  { %v1366_v44 = vmul.f32 %v2236_v48, %v1364_v43 }
0x11fe   :  { %1368 = vrot.lane.b32.xlu0 %v1366_v44, %s2278_s3 }
0x1200   :  { %v1431_v46 = vpop.permute.xlu1 %1430 }
0x1201   :  { %v1433_v47 = vmul.f32 %v2238_v45, %v1431_v46 }
0x1203   :  { %1435 = vrot.lane.b32.xlu1 %v1433_v47, %s2278_s3 }
0x1270   :  { %v1369_v53 = vpop.permute.xlu0 %1368 }
0x1271   :  { %v2720_v54 = vadd.f32 %v1369_v53, %v1361_v52 }
0x1273   :  { %2239 = vtanh.f32 %v2720_v54 }
0x1275   :  { %v1436_v55 = vpop.permute.xlu1 %1435 }
0x1276   :  { %v2724_v56 = vadd.f32 %v1436_v55, %v1428_v51 }
0x1278   :  { %2241 = vtanh.f32 %v2724_v56 }
0x127d   :  { %v2240_v57 = vpop.eup %2239 }
0x127e   :  { %1374 = vrot.lane.b32.xlu0 %v2240_v57, %s2277_s2 }
0x1282   :  { %v2242_v59 = vpop.eup %2241 }
0x1283   :  { %1441 = vrot.lane.b32.xlu1 %v2242_v59, %s2277_s2 }
0x12f0   :  { %v1375_v60 = vpop.permute.xlu0 %1374 }
0x12f1   :  { %v1377_v61 = vmul.f32 %v2236_v48, %v1375_v60 }
0x12f3   :  { %v1446_v62 = vpack.c.bf16 %v1377_v61, %v1377_v61 }
0x12f5   :  { %1448 = vrot.lane.b32.xlu0 %v1446_v62, %s2278_s3  ;;  %v1442_v63 = vpop.permute.xlu1 %1441 }
0x12f6   :  { %v1444_v0 = vmul.f32 %v2238_v45, %v1442_v63  ;;  %v2274_v63 = vld [vmem:[%s2809_s8] ss:$0 sm:$0xff] }
0x12f8   :  { %v1445_v3 = vpack.c.bf16 %v1444_v0, %v1444_v0 }
0x12fa   :  { %1494 = vrot.lane.b32.xlu1 %v1445_v3, %s2278_s3 }
0x1367   :  { %v1449_v5 = vpop.permute.xlu0 %1448 }
0x1368   :  { %2087 = vmatmul.mubr.msk.bf16.vlgmr.msra.gmra.mrb[40].mxu1 %vm41_vm1, %v1449_v5 }
0x1369   :  { %2099 = vmatpush3.bf16.msra.mxu1 %v2686_v20  ;;  %2102 = vmatprep.mubr.msk.bf16.mxu1 %vm2276_vm0, %v2275_v1 }
0x136a   :  { %2100 = vmatprep.subr.bf16.mxu1 %v2275_v1 }
0x136c   :  { %v1495_v49 = vpop.permute.xlu1 %1494 }
0x136d   :  { %2101 = vmatpush3.bf16.msra.mxu1 %v2699_v21  ;;  %2095 = vmatmul.mubr.msk.bf16.vlgmr.msra.gmra.mrb[44].mxu0 %vm41_vm1, %v1495_v49 }
0x136e   :  { %2114 = vmatprep.subr.bf16.mxu1 %v2275_v1  ;;  %2107 = vmatpush3.bf16.msra.mxu0 %v2269_v16 }
0x136f   :  { %2108 = vmatprep.subr.bf16.mxu0 %v2275_v1  ;;  %2110 = vmatprep.mubr.msk.bf16.mxu0 %vm2276_vm0, %v2275_v1 }
0x1370   :  { %2103 = vmatmul.mubr.msk.bf16.vlgmr.msra.gmra.mrb[44].mxu1 %vm41_vm1, %v1495_v49 }
0x1371   :  { %2115 = vmatpush3.bf16.msra.mxu1 %v2270_v6  ;;  %2118 = vmatprep.mubr.msk.bf16.mxu1 %vm2276_vm0, %v2275_v1 }
0x1372   :  { %2116 = vmatprep.subr.bf16.mxu1 %v2275_v1  ;;  %2109 = vmatpush3.bf16.msra.mxu0 %v2271_v7  ;;  %v2273_v1 = vld [vmem:[%s2806_s5] ss:$0 sm:$0xff] }
0x1373   :  { %v184_v18 = vadd.f32 %v2273_v1, %v2476_v50 }
0x1375   :  { %2117 = vmatpush3.bf16.msra.mxu1 %v2272_v8 }
0x143b   :  { %v1487_v9 = vpop.f32.mrb[40].mxu1 }
0x143c   :  { %v2088_v10 = vpop.f32.mrb[41].mxu1 }
0x143d   :  { %v1490_v11 = vpop.f32.mrb[42].mxu1 }
0x143e   :  { %v2089_v12 = vpop.f32.mrb[43].mxu1 }
0x1440   :  { %v1533_v15 = vpop.f32.mrb[44].mxu0 }
0x1441   :  { %v1534_v17 = vadd.f32 %v1533_v15, %v1487_v9  ;;  %v2096_v13 = vpop.f32.mrb[45].mxu0 }
0x1442   :  { %v1536_v19 = vpop.f32.mrb[46].mxu0 }
0x1443   :  { %v1539_v20 = vadd.f32 %v2499_v58, %v1534_v17  ;;  %v1600_v21 = vpop.f32.mrb[44].mxu1  ;;  %v2097_v38 = vpop.f32.mrb[47].mxu0 }
0x1444   :  { %v1606_v22 = vadd.f32 %v1600_v21, %v184_v18  ;;  %v2104_v23 = vpop.f32.mrb[45].mxu1 }
0x1445   :  { %2243 = vtanh.f32 %v1539_v20  ;;  %v1603_v25 = vpop.f32.mrb[46].mxu1  ;;  %v1832_v24 = vmul.f32 -1.442695, %v1539_v20 }
0x1446   :  { %2245 = vtanh.f32 %v1606_v22  ;;  %v2105_v41 = vpop.f32.mrb[47].mxu1  ;;  %v1834_v26 = vmul.f32 -1.442695, %v1606_v22 }
0x1447   :  { %2247 = vpow2.f32 %v1832_v24 }
0x1448   :  { %2249 = vpow2.f32 %v1834_v26 }
0x144f   :  { %v2244_v27 = vpop.eup %2243 }
0x1450   :  { %v2246_v28 = vpop.eup %2245  ;;  %1549 = vrot.lane.b32.xlu0 %v2244_v27, %s2277_s2 }
0x1451   :  { %1616 = vrot.lane.b32.xlu1 %v2246_v28, %s2277_s2  ;;  %v2248_v50 = vpop.eup %2247 }
0x1452   :  { %v2250_v58 = vpop.eup %2249  ;;  %v1543_v40 = vadd.f32 1.0, %v2248_v50 }
0x1453   :  { %v1610_v2 = vadd.f32 1.0, %v2250_v58 }
0x1454   :  { %2251 = vrcp.f32 %v1543_v40 }
0x1455   :  { %2253 = vrcp.f32 %v1610_v2 }
0x145e   :  { %v2252_v4 = vpop.eup %2251 }
0x145f   :  { %v2254_v42 = vpop.eup %2253  ;;  %v1547_v33 = vmul.f32 %v2252_v4, %v2720_v54 }
0x1460   :  { %v1614_v37 = vmul.f32 %v2254_v42, %v2724_v56 }
0x14c2   :  { %v1550_v30 = vpop.permute.xlu0 %1549 }
0x14c3   :  { %v1552_v29 = vmul.f32 %v2252_v4, %v1550_v30  ;;  %v1617_v32 = vpop.permute.xlu1 %1616 }
0x14c4   :  { %v1619_v34 = vmul.f32 %v2254_v42, %v1617_v32 }
0x14c5   :  { %1554 = vrot.lane.b32.xlu0 %v1552_v29, %s2278_s3 }
0x14c6   :  { %1621 = vrot.lane.b32.xlu1 %v1619_v34, %s2278_s3 }
0x1537   :  { %v1555_v36 = vpop.permute.xlu0 %1554 }
0x1538   :  { %v1557_v39 = vadd.f32 %v1555_v36, %v1547_v33  ;;  %v1622_v35 = vpop.permute.xlu1 %1621 }
0x1539   :  { %v1624_v31 = vadd.f32 %v1622_v35, %v1614_v37 }
0x153a   :  { %2255 = vtanh.f32 %v1557_v39 }
0x153b   :  { %2257 = vtanh.f32 %v1624_v31 }
0x1544   :  { %v2256_v14 = vpop.eup %2255 }
0x1545   :  { %v2258_v48 = vpop.eup %2257  ;;  %1560 = vrot.lane.b32.xlu0 %v2256_v14, %s2277_s2 }
0x1546   :  { %1627 = vrot.lane.b32.xlu1 %v2258_v48, %s2277_s2 }
0x15b7   :  { %v1561_v43 = vpop.permute.xlu0 %1560 }
0x15b8   :  { %v1563_v44 = vmul.f32 %v2252_v4, %v1561_v43  ;;  %v1628_v45 = vpop.permute.xlu1 %1627 }
0x15b9   :  { %v1630_v46 = vmul.f32 %v2254_v42, %v1628_v45 }
0x15ba   :  { %v1632_v47 = vpack.c.bf16 %v1563_v44, %v1563_v44 }
0x15bb   :  { %v1631_v52 = vpack.c.bf16 %v1630_v46, %v1630_v46 }
0x15bc   :  { %1634 = vrot.lane.b32.xlu0 %v1632_v47, %s2278_s3 }
0x15bd   :  { %1680 = vrot.lane.b32.xlu1 %v1631_v52, %s2278_s3 }
0x162e   :  { %v1635_v53 = vpop.permute.xlu0 %1634 }
0x162f   :  { %v1681_v54 = vpop.permute.xlu1 %1680  ;;  %2111 = vmatmul.mubr.msk.bf16.vlgmr.msra.gmra.mrb[48].mxu0 %vm41_vm1, %v1635_v53 }
0x1630   :  { %2119 = vmatmul.mubr.msk.bf16.vlgmr.msra.gmra.mrb[48].mxu1 %vm41_vm1, %v1681_v54 }
0x1702   :  { %v1673_v51 = vpop.f32.mrb[48].mxu0 }
0x1703   :  { %v1719_v55 = vpop.f32.mrb[48].mxu1  ;;  %v2112_v56 = vpop.f32.mrb[49].mxu0 }
0x1704   :  { %v1720_v57 = vadd.f32 %v1719_v55, %v1673_v51  ;;  %v2120_v59 = vpop.f32.mrb[49].mxu1  ;;  %v1676_v60 = vpop.f32.mrb[50].mxu0 }
0x1705   :  { %v1722_v61 = vpop.f32.mrb[50].mxu1  ;;  %v2113_v62 = vpop.f32.mrb[51].mxu0 }
0x1706   :  { %v1725_v0 = vadd.f32 %v2274_v63, %v1720_v57  ;;  %v2121_v3 = vpop.f32.mrb[51].mxu1 }
0x1708   :  { %2259 = vtanh.f32 %v1725_v0  ;;  %v1837_v49 = vmul.f32 -1.442695, %v1725_v0 }
0x170a   :  { %2261 = vpow2.f32 %v1837_v49 }
0x1712   :  { %v2260_v5 = vpop.eup %2259 }
0x1713   :  { %1735 = vrot.lane.b32.xlu0 %v2260_v5, %s2277_s2 }
0x1714   :  { %v2262_v16 = vpop.eup %2261 }
0x1715   :  { %v1729_v6 = vadd.f32 1.0, %v2262_v16 }
0x1717   :  { %2263 = vrcp.f32 %v1729_v6 }
0x1721   :  { %v2264_v7 = vpop.eup %2263 }
0x1722   :  { %v1733_v10 = vmul.f32 %v2264_v7, %v1557_v39 }
0x1785   :  { %v1736_v8 = vpop.permute.xlu0 %1735 }
0x1786   :  { %v1738_v9 = vmul.f32 %v2264_v7, %v1736_v8 }
0x1788   :  { %1740 = vrot.lane.b32.xlu1 %v1738_v9, %s2278_s3 }
0x178c   :  { %1751 = vrot.lane.b32.xlu1 %v1630_v46, %s2278_s3 }
0x17fa   :  { %v1741_v11 = vpop.permute.xlu1 %1740 }
0x17fb   :  { %v1743_v12 = vadd.f32 %v1741_v11, %v1733_v10 }
0x17fd   :  { %2265 = vtanh.f32 %v1743_v12 }
0x17fe   :  { %v1752_v15 = vpop.permute.xlu1 %1751 }
0x17ff   :  { %1754 = vst.msk [vmem:[%s2803_s9] sm:$0xff] %vm41_vm1, %v1752_v15 }
0x1807   :  { %v2266_v17 = vpop.eup %2265 }
0x1808   :  { %1746 = vrot.lane.b32.xlu0 %v2266_v17, %s2277_s2 }
0x180c   :  { %1756 = vrot.lane.b32.xlu0 %v1624_v31, %s2279_s13 }
0x1810   :  { %1766 = vrot.lane.b32.xlu0 %v1743_v12, %s2279_s13 }
0x187a   :  { %v1747_v13 = vpop.permute.xlu0 %1746 }
0x187b   :  { %v1749_v1 = vmul.f32 %v2264_v7, %v1747_v13 }
0x187d   :  { %1761 = vrot.lane.b32.xlu1 %v1749_v1, %s2278_s3 }
0x187e   :  { %v1757_v18 = vpop.permute.xlu0 %1756 }
0x187f   :  { %1759 = vst.msk [vmem:[%s2805_s10] sm:$0xff] %vm41_vm1, %v1757_v18 }
0x1882   :  { %v1767_v19 = vpop.permute.xlu0 %1766 }
0x1883   :  { %1839 = vst.msk [vmem:[%s2805_s10 + $0x8] sm:$0xff] %vm41_vm1, %v1767_v19 }
0x18ef   :  { %v1762_v20 = vpop.permute.xlu1 %1761 }
0x18f0   :  { %1838 = vst.msk [vmem:[%s2803_s9 + $0x8] sm:$0xff] %vm41_vm1, %v1762_v20 }

</bundles_post_ra>
